<compile_context>
chip_gen: v7x
topology: tpu7x:2x2x1
jax: 0.10.0
libtpu: 0.0.40
codegen_flags: <defaults>
</compile_context>

<pallas_src>
import functools

import jax
import jax.numpy as jnp
from jax.experimental import pallas as pl
from jax.experimental.pallas import tpu as pltpu

EPS = 1e-6  # timm ViT LayerNorm eps


def _layernorm(v, g, b):
    mu = jnp.mean(v, axis=-1, keepdims=True)
    c = v - mu
    var = jnp.mean(c * c, axis=-1, keepdims=True)
    return c * jax.lax.rsqrt(var + EPS) * g + b


def _vmem_limit_bytes():
    # ~cap - 8 MiB headroom, capped at 100 MiB (v5e/v6e: 128 MiB physical ->
    # 100 MiB; v7x: 64 MiB -> 56 MiB).
    try:
        cap = pltpu.get_tpu_info().vmem_capacity_bytes
    except Exception:  # pragma: no cover - conservative fallback
        cap = 64 * 1024 * 1024
    return int(min(max(cap - 8 * 1024 * 1024, 32 * 1024 * 1024),
                   100 * 1024 * 1024))


# --------------------------------------------------------------------------
# Kernels
# --------------------------------------------------------------------------
def patch_embed_kernel(x_ref, mean_ref, inv_std_ref, w_ref, b_ref, o_ref):
    # x_ref: (1, Np, Pd) patchified pixels for one image
    x = x_ref[0].astype(jnp.float32)                          # (Np, Pd)
    xn = ((x - mean_ref[...]) * inv_std_ref[...]).astype(jnp.bfloat16)
    o = jnp.dot(xn, w_ref[...], preferred_element_type=jnp.float32) + b_ref[...]
    o_ref[0] = o.astype(o_ref.dtype)                          # bf16 out


def fused_blocks_kernel(x_ref, cls_ref, pos_ref,
                        ln1g_ref, ln1b_ref, wqkv_ref, bqkv_ref,
                        wproj_ref, bproj_ref, ls1_ref,
                        ln2g_ref, ln2b_ref, w1_ref, b1_ref, w2_ref, b2_ref,
                        ls2_ref, normg_ref, normb_ref,
                        o_ref, x_acc, *, num_heads):
    d = pl.program_id(1)
    bB, T_pad, D = x_acc.shape
    Np = x_ref.shape[1]
    T_real = pos_ref.shape[1]
    hd = D // num_heads
    M = bB * T_pad

    # init the resident f32 residual stream once per batch tile:
    # fused cls prepend + pos_embed add + sublane padding
    @pl.when(d == 0)
    def _():
        pe = pos_ref[0].astype(jnp.float32)                   # (T_real, D)
        cls = cls_ref[...].astype(jnp.float32)                # (1, D)
        emb = x_ref[...].astype(jnp.float32)                  # (bB, Np, D)
        x_acc[:, 0:1, :] = jnp.broadcast_to(cls + pe[0:1, :], (bB, 1, D))
        x_acc[:, 1:1 + Np, :] = emb + pe[1:1 + Np, :]
        if T_pad > T_real:
            x_acc[:, T_real:, :] = jnp.zeros((bB, T_pad - T_real, D),
                                             jnp.float32)

    x = x_acc[...].reshape(M, D)                              # (M, D) f32

    # additive key-padding mask: padded key columns -> -inf before softmax
    col = jax.lax.broadcasted_iota(jnp.int32, (1, T_pad), 1)
    neg = jnp.where(col < T_real, 0.0, -1e30).astype(jnp.float32)

    # ---- attention branch ----
    h = _layernorm(x, ln1g_ref[0], ln1b_ref[0]).astype(jnp.bfloat16)
    qkv = jnp.dot(h, wqkv_ref[0],
                  preferred_element_type=jnp.float32) + bqkv_ref[0]   # (M, 3D)
    # NOTE: 1/sqrt(head_dim) is folded into the q columns of wqkv/bqkv at init.
    q3 = qkv[:, :D].astype(jnp.bfloat16).reshape(bB, T_pad, D)
    k3 = qkv[:, D:2 * D].astype(jnp.bfloat16).reshape(bB, T_pad, D)
    v3 = qkv[:, 2 * D:].astype(jnp.bfloat16).reshape(bB, T_pad, D)

    head_outs = []
    # TODO(synk): at real UNI scale (16 heads, T=200..264) switch this static
    # unroll to lax.fori_loop with a tuned unroll factor.
    for hh in range(num_heads):
        sl = slice(hh * hd, (hh + 1) * hd)
        s = jnp.einsum('bqd,bkd->bqk', q3[:, :, sl], k3[:, :, sl],
                       preferred_element_type=jnp.float32)    # (bB, Tp, Tp)
        s = s + neg
        s = s - jnp.max(s, axis=-1, keepdims=True)
        p = jnp.exp(s)
        p = p * pl.reciprocal(jnp.sum(p, axis=-1, keepdims=True), approx=True)
        oh = jnp.einsum('bqk,bkd->bqd', p.astype(jnp.bfloat16), v3[:, :, sl],
                        preferred_element_type=jnp.float32)   # (bB, Tp, hd)
        head_outs.append(oh.astype(jnp.bfloat16))

    # assemble (M, D) head-output slab, then ONE K=D projection matmul
    attn = jnp.concatenate(head_outs, axis=-1).reshape(M, D)
    proj = jnp.dot(attn, wproj_ref[0],
                   preferred_element_type=jnp.float32) + bproj_ref[0]
    x = x + ls1_ref[0] * proj                                  # LayerScale res.

    # ---- MLP branch ----
    h2 = _layernorm(x, ln2g_ref[0], ln2b_ref[0]).astype(jnp.bfloat16)
    m = jnp.dot(h2, w1_ref[0], preferred_element_type=jnp.float32) + b1_ref[0]
    # TODO(synk): timm UNI uses exact erf-GELU; tanh approximation used here.
    m = jax.nn.gelu(m, approximate=True).astype(jnp.bfloat16)
    m = jnp.dot(m, w2_ref[0], preferred_element_type=jnp.float32) + b2_ref[0]
    x = x + ls2_ref[0] * m                                     # LayerScale res.

    x3 = x.reshape(bB, T_pad, D)
    x_acc[...] = x3

    # ---- fused epilogue: final LayerNorm on the class tokens only ----
    @pl.when(d == pl.num_programs(1) - 1)
    def _():
        cls_out = x3[:, 0:1, :]                                # (bB, 1, D)
        o_ref[...] = _layernorm(cls_out, normg_ref[...],
                                normb_ref[...]).astype(o_ref.dtype)


# --------------------------------------------------------------------------
# Parameter init (deterministic, synthetic)
# --------------------------------------------------------------------------
def init_params(key, cfg):
    p, C, D = cfg["patch"], cfg["channels"], cfg["embed_dim"]
    T, Dm, depth = cfg["tokens"], cfg["mlp_dim"], cfg["depth"]
    hd = D // cfg["heads"]
    Pd = p * p * C

    def nrm(k, shape, scale=0.02):
        return scale * jax.random.normal(k, shape, jnp.float32)

    keys = jax.random.split(key, 8)
    mean = jnp.broadcast_to(jnp.array([0.485, 0.456, 0.406], jnp.float32),
                            (p, p, C)).reshape(1, Pd)
    std = jnp.broadcast_to(jnp.array([0.229, 0.224, 0.225], jnp.float32),
                           (p, p, C)).reshape(1, Pd)

    # fold the 1/sqrt(head_dim) attention scale into the q projection
    wqkv = nrm(keys[3], (depth, D, 3 * D))
    bqkv = jnp.zeros((depth, 1, 3 * D), jnp.float32)
    scale = 1.0 / (hd ** 0.5)
    wqkv = wqkv.at[:, :, :D].multiply(scale)
    bqkv = bqkv.at[:, :, :D].multiply(scale)

    return {
        "mean_flat": mean,
        "inv_std_flat": 1.0 / std,                             # precomputed 1/std
        "patch_w": nrm(keys[0], (Pd, D)).astype(jnp.bfloat16),
        "patch_b": jnp.zeros((1, D), jnp.float32),
        "cls_token": nrm(keys[1], (1, 1, D)),
        "pos_embed": nrm(keys[2], (1, T, D)),
        "norm_g": jnp.ones((1, D), jnp.float32),
        "norm_b": jnp.zeros((1, D), jnp.float32),
        # per-block params stacked on a leading depth axis (bf16 matmul weights,
        # f32 LN/LayerScale/bias params to avoid accuracy drift)
        "blocks": {
            "ln1_g": jnp.ones((depth, 1, D), jnp.float32),
            "ln1_b": jnp.zeros((depth, 1, D), jnp.float32),
            "wqkv": wqkv.astype(jnp.bfloat16),
            "bqkv": bqkv,
            "wproj": nrm(keys[4], (depth, D, D)).astype(jnp.bfloat16),
            "bproj": jnp.zeros((depth, 1, D), jnp.float32),
            "ls1": jnp.full((depth, 1, D), cfg["init_values"], jnp.float32),
            "ln2_g": jnp.ones((depth, 1, D), jnp.float32),
            "ln2_b": jnp.zeros((depth, 1, D), jnp.float32),
            "w1": nrm(keys[5], (depth, D, Dm)).astype(jnp.bfloat16),
            "b1": jnp.zeros((depth, 1, Dm), jnp.float32),
            "w2": nrm(keys[6], (depth, Dm, D)).astype(jnp.bfloat16),
            "b2": jnp.zeros((depth, 1, D), jnp.float32),
            "ls2": jnp.full((depth, 1, D), cfg["init_values"], jnp.float32),
        },
    }


# --------------------------------------------------------------------------
# Forward wrapper
# --------------------------------------------------------------------------
def uni_forward(x_nchw, params, cfg):
    # layout: convert PyTorch NCHW -> NHWC for the TPU kernels.
    x = jnp.transpose(x_nchw, (0, 2, 3, 1))
    B, H, W, C = x.shape
    p, D = cfg["patch"], cfg["embed_dim"]
    gh, gw = H // p, W // p
    Np, Pd = gh * gw, p * p * C
    T_real = Np + 1
    T_pad = ((T_real + 7) // 8) * 8                 # sublane-aligned token count
    depth, Dm = cfg["depth"], cfg["mlp_dim"]

    # glue: patchify (B, gh, gw, p, p, C) -> (B, Np, Pd), flatten order (ph, pw, C)
    patches = (x.reshape(B, gh, p, gw, p, C)
                 .transpose(0, 1, 3, 2, 4, 5)
                 .reshape(B, Np, Pd))

    # ---- patch embedding (normalize + linear projection, bf16 out) ----
    emb = pl.pallas_call(
        patch_embed_kernel,
        out_shape=jax.ShapeDtypeStruct((B, Np, D), jnp.bfloat16),
        grid=(B,),
        in_specs=[
            pl.BlockSpec((1, Np, Pd), lambda b: (b, 0, 0)),
            pl.BlockSpec((1, Pd), lambda b: (0, 0)),
            pl.BlockSpec((1, Pd), lambda b: (0, 0)),
            pl.BlockSpec((Pd, D), lambda b: (0, 0)),
            pl.BlockSpec((1, D), lambda b: (0, 0)),
        ],
        out_specs=pl.BlockSpec((1, Np, D), lambda b: (b, 0, 0)),
        compiler_params=pltpu.CompilerParams(dimension_semantics=("parallel",)),
    )(patches, params["mean_flat"], params["inv_std_flat"],
      params["patch_w"], params["patch_b"])

    # batch tile: amortize each depth-step weight fetch over bB images, but keep
    # >= 2 grid steps on the parallel batch axis (v7x two-TensorCore sharding).
    bB = min(cfg.get("batch_tile", 2), B)
    while bB > 1 and (B % bB != 0 or B // bB < 2):
        bB -= 1

    blk = params["blocks"]

    def wspec(rc):  # stacked (depth, r, c) param: one depth slice per grid step
        return pl.BlockSpec((1,) + rc, lambda b, d: (d, 0, 0))

    # TODO(synk): dynamic_img_size pos-embed interpolation not implemented.
    # TODO(synk): at real UNI scale on v7x (64 MiB VMEM), additionally tile the
    # MLP weights over Dm (or use pipeline_mode=pl.Buffered(1) on w1/w2) so full
    # double-buffering still fits.

    # ---- all transformer blocks + cls prepend/pos add + final cls LN fused ----
    feats = pl.pallas_call(
        functools.partial(fused_blocks_kernel, num_heads=cfg["heads"]),
        out_shape=jax.ShapeDtypeStruct((B, 1, D), jnp.float32),
        grid=(B // bB, depth),
        in_specs=[
            pl.BlockSpec((bB, Np, D), lambda b, d: (b, 0, 0)),   # patch tokens
            pl.BlockSpec((1, D), lambda b, d: (0, 0)),           # cls token
            pl.BlockSpec((1, T_real, D), lambda b, d: (0, 0, 0)),  # pos embed
            wspec((1, D)),                  # ln1 gamma
            wspec((1, D)),                  # ln1 beta
            wspec((D, 3 * D)),              # qkv weight (bf16)
            wspec((1, 3 * D)),              # qkv bias
            wspec((D, D)),                  # proj weight (bf16)
            wspec((1, D)),                  # proj bias
            wspec((1, D)),                  # LayerScale 1
            wspec((1, D)),                  # ln2 gamma
            wspec((1, D)),                  # ln2 beta
            wspec((D, Dm)),                 # mlp fc1 weight (bf16)
            wspec((1, Dm)),                 # mlp fc1 bias
            wspec((Dm, D)),                 # mlp fc2 weight (bf16)
            wspec((1, D)),                  # mlp fc2 bias
            wspec((1, D)),                  # LayerScale 2
            pl.BlockSpec((1, D), lambda b, d: (0, 0)),            # final norm g
            pl.BlockSpec((1, D), lambda b, d: (0, 0)),            # final norm b
        ],
        out_specs=pl.BlockSpec((bB, 1, D), lambda b, d: (b, 0, 0)),
        scratch_shapes=[pltpu.VMEM((bB, T_pad, D), jnp.float32)],  # residuals
        compiler_params=pltpu.CompilerParams(
            dimension_semantics=("parallel", "arbitrary"),
            vmem_limit_bytes=_vmem_limit_bytes()),
    )(emb, params["cls_token"][0], params["pos_embed"],
      blk["ln1_g"], blk["ln1_b"], blk["wqkv"], blk["bqkv"],
      blk["wproj"], blk["bproj"], blk["ls1"],
      blk["ln2_g"], blk["ln2_b"], blk["w1"], blk["b1"], blk["w2"], blk["b2"],
      blk["ls2"], params["norm_g"], params["norm_b"])

    return feats[:, 0, :]                                       # (B, D)


# --------------------------------------------------------------------------
if __name__ == "__main__":
    cfg = dict(
        patch=16,
        channels=3,
        img=32,            # small synthetic resolution (dynamic_img_size=True)
        embed_dim=128,     # scaled-down stand-in for feat_dim=1024
        heads=4,
        depth=2,           # scaled-down stand-in for depth=24
        mlp_ratio=4,
        init_values=1e-5,  # LayerScale init, same as the real UNI checkpoint
        batch_tile=2,      # images sharing each depth-step weight fetch
    )
    cfg["mlp_dim"] = cfg["embed_dim"] * cfg["mlp_ratio"]
    num_patches = (cfg["img"] // cfg["patch"]) ** 2
    cfg["tokens"] = num_patches + 1

    key = jax.random.PRNGKey(0)
    k_params, k_x = jax.random.split(key)
    params = init_params(k_params, cfg)

    # PyTorch-style NCHW image input in [0, 1]
    x = jax.random.uniform(k_x, (4, cfg["channels"], cfg["img"], cfg["img"]),
                           jnp.float32)

    feats = jax.jit(lambda xx: uni_forward(xx, params, cfg))(x)
    jax.block_until_ready(feats)
    assert feats.shape == (4, cfg["embed_dim"]) and feats.dtype == jnp.float32
    print("KERNEL_OK")
</pallas_src>

<mosaic_0001>
module attributes {stable_mosaic.version = 11 : i64} {
  func.func @patch_embed_kernel(%arg0: i32, %arg1: memref<1x4x768xf32, #tpu.memory_space<vmem>>, %arg2: memref<1x768xf32, #tpu.memory_space<vmem>>, %arg3: memref<1x768xf32, #tpu.memory_space<vmem>>, %arg4: memref<768x128xbf16, #tpu.memory_space<vmem>>, %arg5: memref<1x128xf32, #tpu.memory_space<vmem>>, %arg6: memref<1x4x128xbf16, #tpu.memory_space<vmem>>) attributes {dimension_semantics = [#tpu.dimension_semantics<parallel>], iteration_bounds = array<i64: 4>, scalar_prefetch = 0 : i64, scratch_operands = 0 : i64, tpu.core_type = #tpu.core_type<tc>, window_params = [{transform_indices = @transform_0, window_bounds = array<i64: 1, 4, 768>}, {pipeline_mode = #tpu.pipeline_mode<synchronous>, transform_indices = @transform_1, window_bounds = array<i64: 1, 768>}, {pipeline_mode = #tpu.pipeline_mode<synchronous>, transform_indices = @transform_2, window_bounds = array<i64: 1, 768>}, {pipeline_mode = #tpu.pipeline_mode<synchronous>, transform_indices = @transform_3, window_bounds = array<i64: 768, 128>}, {pipeline_mode = #tpu.pipeline_mode<synchronous>, transform_indices = @transform_4, window_bounds = array<i64: 1, 128>}, {transform_indices = @transform_5, window_bounds = array<i64: 1, 4, 128>}]} {
    %c0 = arith.constant 0 : index
    %c0_0 = arith.constant 0 : index
    %c0_1 = arith.constant 0 : index
    %0 = vector.load %arg1[%c0, %c0_0, %c0_1] : memref<1x4x768xf32, #tpu.memory_space<vmem>>, vector<1x4x768xf32>
    %1 = vector.shape_cast %0 : vector<1x4x768xf32> to vector<4x768xf32>
    %c0_2 = arith.constant 0 : index
    %c0_3 = arith.constant 0 : index
    %2 = vector.load %arg2[%c0_2, %c0_3] : memref<1x768xf32, #tpu.memory_space<vmem>>, vector<1x768xf32>
    %3 = vector.broadcast %2 : vector<1x768xf32> to vector<4x768xf32>
    %4 = arith.subf %1, %3 : vector<4x768xf32>
    %c0_4 = arith.constant 0 : index
    %c0_5 = arith.constant 0 : index
    %5 = vector.load %arg3[%c0_4, %c0_5] : memref<1x768xf32, #tpu.memory_space<vmem>>, vector<1x768xf32>
    %6 = vector.broadcast %5 : vector<1x768xf32> to vector<4x768xf32>
    %7 = arith.mulf %4, %6 : vector<4x768xf32>
    %8 = arith.truncf %7 : vector<4x768xf32> to vector<4x768xbf16>
    %c0_6 = arith.constant 0 : index
    %c0_7 = arith.constant 0 : index
    %9 = vector.load %arg4[%c0_6, %c0_7] : memref<768x128xbf16, #tpu.memory_space<vmem>>, vector<768x128xbf16>
    %cst = arith.constant dense<0.000000e+00> : vector<4x128xf32>
    %10 = tpu.matmul %8, %9, %cst {dimension_numbers = #tpu.dot_dimension_numbers<[1], [0], [0], [1], [0, 0, 1, 1], [], []>} : vector<4x768xbf16>, vector<768x128xbf16>, vector<4x128xf32> -> vector<4x128xf32>
    %c0_8 = arith.constant 0 : index
    %c0_9 = arith.constant 0 : index
    %11 = vector.load %arg5[%c0_8, %c0_9] : memref<1x128xf32, #tpu.memory_space<vmem>>, vector<1x128xf32>
    %12 = vector.broadcast %11 : vector<1x128xf32> to vector<4x128xf32>
    %13 = arith.addf %10, %12 : vector<4x128xf32>
    %14 = arith.truncf %13 : vector<4x128xf32> to vector<4x128xbf16>
    %c0_10 = arith.constant 0 : index
    %c0_11 = arith.constant 0 : index
    %c0_12 = arith.constant 0 : index
    %15 = vector.load %arg6[%c0_10, %c0_11, %c0_12] : memref<1x4x128xbf16, #tpu.memory_space<vmem>>, vector<1x4x128xbf16>
    %16 = vector.shape_cast %15 : vector<1x4x128xbf16> to vector<4x128xbf16>
    %17 = vector.shape_cast %14 : vector<4x128xbf16> to vector<1x4x128xbf16>
    tpu.vector_store %arg6[%c0_10, %c0_11, %c0_12], %17 {strides = array<i32>} : memref<1x4x128xbf16, #tpu.memory_space<vmem>>, vector<1x4x128xbf16>,
    return
  }
  func.func @transform_0(%arg0: i32) -> (i32, i32, i32) {
    %c0_i32 = arith.constant 0 : i32
    %c0_i32_0 = arith.constant 0 : i32
    %c0_i32_1 = arith.constant 0 : i32
    return %arg0, %c0_i32, %c0_i32_0 : i32, i32, i32
  }
  func.func @transform_1(%arg0: i32) -> (i32, i32) {
    %c0_i32 = arith.constant 0 : i32
    %c0_i32_0 = arith.constant 0 : i32
    %c0_i32_1 = arith.constant 0 : i32
    return %c0_i32, %c0_i32_0 : i32, i32
  }
  func.func @transform_2(%arg0: i32) -> (i32, i32) {
    %c0_i32 = arith.constant 0 : i32
    %c0_i32_0 = arith.constant 0 : i32
    %c0_i32_1 = arith.constant 0 : i32
    return %c0_i32, %c0_i32_0 : i32, i32
  }
  func.func @transform_3(%arg0: i32) -> (i32, i32) {
    %c0_i32 = arith.constant 0 : i32
    %c0_i32_0 = arith.constant 0 : i32
    %c0_i32_1 = arith.constant 0 : i32
    return %c0_i32, %c0_i32_0 : i32, i32
  }
  func.func @transform_4(%arg0: i32) -> (i32, i32) {
    %c0_i32 = arith.constant 0 : i32
    %c0_i32_0 = arith.constant 0 : i32
    %c0_i32_1 = arith.constant 0 : i32
    return %c0_i32, %c0_i32_0 : i32, i32
  }
  func.func @transform_5(%arg0: i32) -> (i32, i32, i32) {
    %c0_i32 = arith.constant 0 : i32
    %c0_i32_0 = arith.constant 0 : i32
    %c0_i32_1 = arith.constant 0 : i32
    return %arg0, %c0_i32, %c0_i32_0 : i32, i32, i32
  }
}

module attributes {stable_mosaic.version = 11 : i64} {
  func.func @fused_blocks_kernel(%arg0: i32, %arg1: i32, %arg2: memref<2x4x128xbf16, #tpu.memory_space<vmem>>, %arg3: memref<1x128xf32, #tpu.memory_space<vmem>>, %arg4: memref<1x5x128xf32, #tpu.memory_space<vmem>>, %arg5: memref<1x1x128xf32, #tpu.memory_space<vmem>>, %arg6: memref<1x1x128xf32, #tpu.memory_space<vmem>>, %arg7: memref<1x128x384xbf16, #tpu.memory_space<vmem>>, %arg8: memref<1x1x384xf32, #tpu.memory_space<vmem>>, %arg9: memref<1x128x128xbf16, #tpu.memory_space<vmem>>, %arg10: memref<1x1x128xf32, #tpu.memory_space<vmem>>, %arg11: memref<1x1x128xf32, #tpu.memory_space<vmem>>, %arg12: memref<1x1x128xf32, #tpu.memory_space<vmem>>, %arg13: memref<1x1x128xf32, #tpu.memory_space<vmem>>, %arg14: memref<1x128x512xbf16, #tpu.memory_space<vmem>>, %arg15: memref<1x1x512xf32, #tpu.memory_space<vmem>>, %arg16: memref<1x512x128xbf16, #tpu.memory_space<vmem>>, %arg17: memref<1x1x128xf32, #tpu.memory_space<vmem>>, %arg18: memref<1x1x128xf32, #tpu.memory_space<vmem>>, %arg19: memref<1x128xf32, #tpu.memory_space<vmem>>, %arg20: memref<1x128xf32, #tpu.memory_space<vmem>>, %arg21: memref<2x1x128xf32, #tpu.memory_space<vmem>>, %arg22: memref<2x8x128xf32, #tpu.memory_space<vmem>>) attributes {dimension_semantics = [#tpu.dimension_semantics<parallel>, #tpu.dimension_semantics<arbitrary>], iteration_bounds = array<i64: 2, 2>, scalar_prefetch = 0 : i64, scratch_operands = 1 : i64, tpu.core_type = #tpu.core_type<tc>, window_params = [{transform_indices = @transform_0, window_bounds = array<i64: 2, 4, 128>}, {pipeline_mode = #tpu.pipeline_mode<synchronous>, transform_indices = @transform_1, window_bounds = array<i64: 1, 128>}, {pipeline_mode = #tpu.pipeline_mode<synchronous>, transform_indices = @transform_2, window_bounds = array<i64: 1, 5, 128>}, {transform_indices = @transform_3, window_bounds = array<i64: 1, 1, 128>}, {transform_indices = @transform_4, window_bounds = array<i64: 1, 1, 128>}, {transform_indices = @transform_5, window_bounds = array<i64: 1, 128, 384>}, {transform_indices = @transform_6, window_bounds = array<i64: 1, 1, 384>}, {transform_indices = @transform_7, window_bounds = array<i64: 1, 128, 128>}, {transform_indices = @transform_8, window_bounds = array<i64: 1, 1, 128>}, {transform_indices = @transform_9, window_bounds = array<i64: 1, 1, 128>}, {transform_indices = @transform_10, window_bounds = array<i64: 1, 1, 128>}, {transform_indices = @transform_11, window_bounds = array<i64: 1, 1, 128>}, {transform_indices = @transform_12, window_bounds = array<i64: 1, 128, 512>}, {transform_indices = @transform_13, window_bounds = array<i64: 1, 1, 512>}, {transform_indices = @transform_14, window_bounds = array<i64: 1, 512, 128>}, {transform_indices = @transform_15, window_bounds = array<i64: 1, 1, 128>}, {transform_indices = @transform_16, window_bounds = array<i64: 1, 1, 128>}, {pipeline_mode = #tpu.pipeline_mode<synchronous>, transform_indices = @transform_17, window_bounds = array<i64: 1, 128>}, {pipeline_mode = #tpu.pipeline_mode<synchronous>, transform_indices = @transform_18, window_bounds = array<i64: 1, 128>}, {transform_indices = @transform_19, window_bounds = array<i64: 2, 1, 128>}]} {
    %c0_i32 = arith.constant 0 : i32
    %0 = arith.cmpi eq, %arg1, %c0_i32 : i32
    %1 = arith.extui %0 : i1 to i32
    %c0_i32_0 = arith.constant 0 : i32
    %2 = arith.cmpi ne, %1, %c0_i32_0 : i32
    scf.if %2 {
      %c0_84 = arith.constant 0 : index
      %c0_85 = arith.constant 0 : index
      %c0_86 = arith.constant 0 : index
      %209 = vector.load %arg4[%c0_84, %c0_85, %c0_86] : memref<1x5x128xf32, #tpu.memory_space<vmem>>, vector<1x5x128xf32>
      %210 = vector.shape_cast %209 : vector<1x5x128xf32> to vector<5x128xf32>
      %c0_87 = arith.constant 0 : index
      %c0_88 = arith.constant 0 : index
      %211 = vector.load %arg3[%c0_87, %c0_88] : memref<1x128xf32, #tpu.memory_space<vmem>>, vector<1x128xf32>
      %c0_89 = arith.constant 0 : index
      %c0_90 = arith.constant 0 : index
      %c0_91 = arith.constant 0 : index
      %212 = vector.load %arg2[%c0_89, %c0_90, %c0_91] : memref<2x4x128xbf16, #tpu.memory_space<vmem>>, vector<2x4x128xbf16>
      %213 = arith.extf %212 : vector<2x4x128xbf16> to vector<2x4x128xf32>
      %214 = vector.extract_strided_slice %210 {offsets = [0, 0], sizes = [1, 128], strides = [1, 1]} : vector<5x128xf32> to vector<1x128xf32>
      %215 = arith.addf %211, %214 : vector<1x128xf32>
      %216 = vector.shape_cast %215 : vector<1x128xf32> to vector<1x1x128xf32>
      %217 = vector.broadcast %216 : vector<1x1x128xf32> to vector<2x1x128xf32>
      %c0_92 = arith.constant 0 : index
      %c0_93 = arith.constant 0 : index
      %c0_94 = arith.constant 0 : index
      %218 = vector.load %arg22[%c0_92, %c0_93, %c0_94] : memref<2x8x128xf32, #tpu.memory_space<vmem>>, vector<2x1x128xf32>
      tpu.vector_store %arg22[%c0_92, %c0_93, %c0_94], %217 {strides = array<i32>} : memref<2x8x128xf32, #tpu.memory_space<vmem>>, vector<2x1x128xf32>,
      %219 = vector.extract_strided_slice %210 {offsets = [1, 0], sizes = [4, 128], strides = [1, 1]} : vector<5x128xf32> to vector<4x128xf32>
      %220 = vector.shape_cast %219 : vector<4x128xf32> to vector<1x4x128xf32>
      %221 = vector.broadcast %220 : vector<1x4x128xf32> to vector<2x4x128xf32>
      %222 = arith.addf %213, %221 : vector<2x4x128xf32>
      %c0_95 = arith.constant 0 : index
      %c1 = arith.constant 1 : index
      %c0_96 = arith.constant 0 : index
      %223 = vector.load %arg22[%c0_95, %c1, %c0_96] : memref<2x8x128xf32, #tpu.memory_space<vmem>>, vector<2x4x128xf32>
      tpu.vector_store %arg22[%c0_95, %c1, %c0_96], %222 {strides = array<i32>} : memref<2x8x128xf32, #tpu.memory_space<vmem>>, vector<2x4x128xf32>,
      %cst_97 = arith.constant 0.000000e+00 : f32
      %224 = vector.broadcast %cst_97 : f32 to vector<2x3x128xf32>
      %c0_98 = arith.constant 0 : index
      %c5 = arith.constant 5 : index
      %c0_99 = arith.constant 0 : index
      %225 = vector.load %arg22[%c0_98, %c5, %c0_99] : memref<2x8x128xf32, #tpu.memory_space<vmem>>, vector<2x3x128xf32>
      tpu.vector_store %arg22[%c0_98, %c5, %c0_99], %224 {strides = array<i32>} : memref<2x8x128xf32, #tpu.memory_space<vmem>>, vector<2x3x128xf32>,
    } else {
    }
    %c0 = arith.constant 0 : index
    %c0_1 = arith.constant 0 : index
    %c0_2 = arith.constant 0 : index
    %3 = vector.load %arg22[%c0, %c0_1, %c0_2] : memref<2x8x128xf32, #tpu.memory_space<vmem>>, vector<2x8x128xf32>
    %4 = vector.shape_cast %3 : vector<2x8x128xf32> to vector<16x128xf32>
    %5 = tpu.iota {dimensions = array<i32: 1>} : vector<1x8xi32>
    %c5_i32 = arith.constant 5 : i32
    %6 = vector.broadcast %c5_i32 : i32 to vector<1x8xi32>
    %7 = arith.cmpi slt, %5, %6 : vector<1x8xi32>
    %cst = arith.constant 0.000000e+00 : f32
    %cst_3 = arith.constant -1.000000e+30 : f32
    %8 = vector.broadcast %cst : f32 to vector<1x8xf32>
    %9 = vector.broadcast %cst_3 : f32 to vector<1x8xf32>
    %10 = arith.select %7, %8, %9 : vector<1x8xi1>, vector<1x8xf32>
    %c0_4 = arith.constant 0 : index
    %c0_5 = arith.constant 0 : index
    %c0_6 = arith.constant 0 : index
    %11 = vector.load %arg5[%c0_4, %c0_5, %c0_6] : memref<1x1x128xf32, #tpu.memory_space<vmem>>, vector<1x1x128xf32>
    %12 = vector.shape_cast %11 : vector<1x1x128xf32> to vector<1x128xf32>
    %c0_7 = arith.constant 0 : index
    %c0_8 = arith.constant 0 : index
    %c0_9 = arith.constant 0 : index
    %13 = vector.load %arg6[%c0_7, %c0_8, %c0_9] : memref<1x1x128xf32, #tpu.memory_space<vmem>>, vector<1x1x128xf32>
    %14 = vector.shape_cast %13 : vector<1x1x128xf32> to vector<1x128xf32>
    %cst_10 = arith.constant dense<0.000000e+00> : vector<16xf32>
    %15 = vector.multi_reduction <add>, %4, %cst_10 [1] : vector<16x128xf32> to vector<16xf32>
    %16 = vector.shape_cast %15 : vector<16xf32> to vector<16x1xf32>
    %cst_11 = arith.constant 1.280000e+02 : f32
    %17 = vector.broadcast %cst_11 : f32 to vector<16x1xf32>
    %18 = arith.divf %16, %17 : vector<16x1xf32>
    %19 = vector.broadcast %18 : vector<16x1xf32> to vector<16x128xf32>
    %20 = arith.subf %4, %19 : vector<16x128xf32>
    %21 = arith.mulf %20, %20 : vector<16x128xf32>
    %cst_12 = arith.constant dense<0.000000e+00> : vector<16xf32>
    %22 = vector.multi_reduction <add>, %21, %cst_12 [1] : vector<16x128xf32> to vector<16xf32>
    %23 = vector.shape_cast %22 : vector<16xf32> to vector<16x1xf32>
    %cst_13 = arith.constant 1.280000e+02 : f32
    %24 = vector.broadcast %cst_13 : f32 to vector<16x1xf32>
    %25 = arith.divf %23, %24 : vector<16x1xf32>
    %cst_14 = arith.constant 9.99999997E-7 : f32
    %26 = vector.broadcast %cst_14 : f32 to vector<16x1xf32>
    %27 = arith.addf %25, %26 : vector<16x1xf32>
    %28 = math.rsqrt %27 : vector<16x1xf32>
    %29 = vector.broadcast %28 : vector<16x1xf32> to vector<16x128xf32>
    %30 = arith.mulf %20, %29 : vector<16x128xf32>
    %31 = vector.broadcast %12 : vector<1x128xf32> to vector<16x128xf32>
    %32 = arith.mulf %30, %31 : vector<16x128xf32>
    %33 = vector.broadcast %14 : vector<1x128xf32> to vector<16x128xf32>
    %34 = arith.addf %32, %33 : vector<16x128xf32>
    %35 = arith.truncf %34 : vector<16x128xf32> to vector<16x128xbf16>
    %c0_15 = arith.constant 0 : index
    %c0_16 = arith.constant 0 : index
    %c0_17 = arith.constant 0 : index
    %36 = vector.load %arg7[%c0_15, %c0_16, %c0_17] : memref<1x128x384xbf16, #tpu.memory_space<vmem>>, vector<1x128x384xbf16>
    %37 = vector.shape_cast %36 : vector<1x128x384xbf16> to vector<128x384xbf16>
    %cst_18 = arith.constant dense<0.000000e+00> : vector<16x384xf32>
    %38 = tpu.matmul %35, %37, %cst_18 {dimension_numbers = #tpu.dot_dimension_numbers<[1], [0], [0], [1], [0, 0, 1, 1], [], []>} : vector<16x128xbf16>, vector<128x384xbf16>, vector<16x384xf32> -> vector<16x384xf32>
    %c0_19 = arith.constant 0 : index
    %c0_20 = arith.constant 0 : index
    %c0_21 = arith.constant 0 : index
    %39 = vector.load %arg8[%c0_19, %c0_20, %c0_21] : memref<1x1x384xf32, #tpu.memory_space<vmem>>, vector<1x1x384xf32>
    %40 = vector.shape_cast %39 : vector<1x1x384xf32> to vector<1x384xf32>
    %41 = vector.broadcast %40 : vector<1x384xf32> to vector<16x384xf32>
    %42 = arith.addf %38, %41 : vector<16x384xf32>
    %43 = vector.extract_strided_slice %42 {offsets = [0, 0], sizes = [16, 128], strides = [1, 1]} : vector<16x384xf32> to vector<16x128xf32>
    %44 = arith.truncf %43 : vector<16x128xf32> to vector<16x128xbf16>
    %45 = vector.shape_cast %44 : vector<16x128xbf16> to vector<2x8x128xbf16>
    %46 = vector.extract_strided_slice %42 {offsets = [0, 128], sizes = [16, 128], strides = [1, 1]} : vector<16x384xf32> to vector<16x128xf32>
    %47 = arith.truncf %46 : vector<16x128xf32> to vector<16x128xbf16>
    %48 = vector.shape_cast %47 : vector<16x128xbf16> to vector<2x8x128xbf16>
    %49 = vector.extract_strided_slice %42 {offsets = [0, 256], sizes = [16, 128], strides = [1, 1]} : vector<16x384xf32> to vector<16x128xf32>
    %50 = arith.truncf %49 : vector<16x128xf32> to vector<16x128xbf16>
    %51 = vector.shape_cast %50 : vector<16x128xbf16> to vector<2x8x128xbf16>
    %52 = vector.extract_strided_slice %45 {offsets = [0, 0, 0], sizes = [2, 8, 32], strides = [1, 1, 1]} : vector<2x8x128xbf16> to vector<2x8x32xbf16>
    %53 = vector.extract_strided_slice %48 {offsets = [0, 0, 0], sizes = [2, 8, 32], strides = [1, 1, 1]} : vector<2x8x128xbf16> to vector<2x8x32xbf16>
    "tpu.trace_start"() <{level = 10 : i32, message = "bqd,bkd->bqk"}> : () -> ()
    %cst_22 = arith.constant dense<0.000000e+00> : vector<2x8x8xf32>
    %54 = tpu.matmul %52, %53, %cst_22 {dimension_numbers = #tpu.dot_dimension_numbers<[2], [2], [1], [1], [0, 0, 0, 1, 1, 1], [0], [0]>} : vector<2x8x32xbf16>, vector<2x8x32xbf16>, vector<2x8x8xf32> -> vector<2x8x8xf32>
    "tpu.trace_stop"() : () -> ()
    %55 = vector.shape_cast %10 : vector<1x8xf32> to vector<1x1x8xf32>
    %56 = vector.broadcast %55 : vector<1x1x8xf32> to vector<2x8x8xf32>
    %57 = arith.addf %54, %56 : vector<2x8x8xf32>
    %cst_23 = arith.constant dense<0xFF800000> : vector<2x8xf32>
    %58 = vector.multi_reduction <maximumf>, %57, %cst_23 [2] : vector<2x8x8xf32> to vector<2x8xf32>
    %59 = vector.shape_cast %58 : vector<2x8xf32> to vector<2x8x1xf32>
    %60 = vector.broadcast %59 : vector<2x8x1xf32> to vector<2x8x8xf32>
    %61 = arith.subf %57, %60 : vector<2x8x8xf32>
    %62 = math.exp %61 : vector<2x8x8xf32>
    %cst_24 = arith.constant dense<0.000000e+00> : vector<2x8xf32>
    %63 = vector.multi_reduction <add>, %62, %cst_24 [2] : vector<2x8x8xf32> to vector<2x8xf32>
    %64 = vector.shape_cast %63 : vector<2x8xf32> to vector<2x8x1xf32>
    %65 = tpu.reciprocal %64 {approx = true} : vector<2x8x1xf32> -> vector<2x8x1xf32>
    %66 = vector.broadcast %65 : vector<2x8x1xf32> to vector<2x8x8xf32>
    %67 = arith.mulf %62, %66 : vector<2x8x8xf32>
    %68 = arith.truncf %67 : vector<2x8x8xf32> to vector<2x8x8xbf16>
    %69 = vector.extract_strided_slice %51 {offsets = [0, 0, 0], sizes = [2, 8, 32], strides = [1, 1, 1]} : vector<2x8x128xbf16> to vector<2x8x32xbf16>
    "tpu.trace_start"() <{level = 10 : i32, message = "bqk,bkd->bqd"}> : () -> ()
    %cst_25 = arith.constant dense<0.000000e+00> : vector<2x8x32xf32>
    %70 = tpu.matmul %68, %69, %cst_25 {dimension_numbers = #tpu.dot_dimension_numbers<[2], [1], [1], [2], [0, 0, 0, 1, 1, 2], [0], [0]>} : vector<2x8x8xbf16>, vector<2x8x32xbf16>, vector<2x8x32xf32> -> vector<2x8x32xf32>
    "tpu.trace_stop"() : () -> ()
    %71 = arith.truncf %70 : vector<2x8x32xf32> to vector<2x8x32xbf16>
    %72 = vector.extract_strided_slice %45 {offsets = [0, 0, 32], sizes = [2, 8, 32], strides = [1, 1, 1]} : vector<2x8x128xbf16> to vector<2x8x32xbf16>
    %73 = vector.extract_strided_slice %48 {offsets = [0, 0, 32], sizes = [2, 8, 32], strides = [1, 1, 1]} : vector<2x8x128xbf16> to vector<2x8x32xbf16>
    "tpu.trace_start"() <{level = 10 : i32, message = "bqd,bkd->bqk"}> : () -> ()
    %cst_26 = arith.constant dense<0.000000e+00> : vector<2x8x8xf32>
    %74 = tpu.matmul %72, %73, %cst_26 {dimension_numbers = #tpu.dot_dimension_numbers<[2], [2], [1], [1], [0, 0, 0, 1, 1, 1], [0], [0]>} : vector<2x8x32xbf16>, vector<2x8x32xbf16>, vector<2x8x8xf32> -> vector<2x8x8xf32>
    "tpu.trace_stop"() : () -> ()
    %75 = vector.shape_cast %10 : vector<1x8xf32> to vector<1x1x8xf32>
    %76 = vector.broadcast %75 : vector<1x1x8xf32> to vector<2x8x8xf32>
    %77 = arith.addf %74, %76 : vector<2x8x8xf32>
    %cst_27 = arith.constant dense<0xFF800000> : vector<2x8xf32>
    %78 = vector.multi_reduction <maximumf>, %77, %cst_27 [2] : vector<2x8x8xf32> to vector<2x8xf32>
    %79 = vector.shape_cast %78 : vector<2x8xf32> to vector<2x8x1xf32>
    %80 = vector.broadcast %79 : vector<2x8x1xf32> to vector<2x8x8xf32>
    %81 = arith.subf %77, %80 : vector<2x8x8xf32>
    %82 = math.exp %81 : vector<2x8x8xf32>
    %cst_28 = arith.constant dense<0.000000e+00> : vector<2x8xf32>
    %83 = vector.multi_reduction <add>, %82, %cst_28 [2] : vector<2x8x8xf32> to vector<2x8xf32>
    %84 = vector.shape_cast %83 : vector<2x8xf32> to vector<2x8x1xf32>
    %85 = tpu.reciprocal %84 {approx = true} : vector<2x8x1xf32> -> vector<2x8x1xf32>
    %86 = vector.broadcast %85 : vector<2x8x1xf32> to vector<2x8x8xf32>
    %87 = arith.mulf %82, %86 : vector<2x8x8xf32>
    %88 = arith.truncf %87 : vector<2x8x8xf32> to vector<2x8x8xbf16>
    %89 = vector.extract_strided_slice %51 {offsets = [0, 0, 32], sizes = [2, 8, 32], strides = [1, 1, 1]} : vector<2x8x128xbf16> to vector<2x8x32xbf16>
    "tpu.trace_start"() <{level = 10 : i32, message = "bqk,bkd->bqd"}> : () -> ()
    %cst_29 = arith.constant dense<0.000000e+00> : vector<2x8x32xf32>
    %90 = tpu.matmul %88, %89, %cst_29 {dimension_numbers = #tpu.dot_dimension_numbers<[2], [1], [1], [2], [0, 0, 0, 1, 1, 2], [0], [0]>} : vector<2x8x8xbf16>, vector<2x8x32xbf16>, vector<2x8x32xf32> -> vector<2x8x32xf32>
    "tpu.trace_stop"() : () -> ()
    %91 = arith.truncf %90 : vector<2x8x32xf32> to vector<2x8x32xbf16>
    %92 = vector.extract_strided_slice %45 {offsets = [0, 0, 64], sizes = [2, 8, 32], strides = [1, 1, 1]} : vector<2x8x128xbf16> to vector<2x8x32xbf16>
    %93 = vector.extract_strided_slice %48 {offsets = [0, 0, 64], sizes = [2, 8, 32], strides = [1, 1, 1]} : vector<2x8x128xbf16> to vector<2x8x32xbf16>
    "tpu.trace_start"() <{level = 10 : i32, message = "bqd,bkd->bqk"}> : () -> ()
    %cst_30 = arith.constant dense<0.000000e+00> : vector<2x8x8xf32>
    %94 = tpu.matmul %92, %93, %cst_30 {dimension_numbers = #tpu.dot_dimension_numbers<[2], [2], [1], [1], [0, 0, 0, 1, 1, 1], [0], [0]>} : vector<2x8x32xbf16>, vector<2x8x32xbf16>, vector<2x8x8xf32> -> vector<2x8x8xf32>
    "tpu.trace_stop"() : () -> ()
    %95 = vector.shape_cast %10 : vector<1x8xf32> to vector<1x1x8xf32>
    %96 = vector.broadcast %95 : vector<1x1x8xf32> to vector<2x8x8xf32>
    %97 = arith.addf %94, %96 : vector<2x8x8xf32>
    %cst_31 = arith.constant dense<0xFF800000> : vector<2x8xf32>
    %98 = vector.multi_reduction <maximumf>, %97, %cst_31 [2] : vector<2x8x8xf32> to vector<2x8xf32>
    %99 = vector.shape_cast %98 : vector<2x8xf32> to vector<2x8x1xf32>
    %100 = vector.broadcast %99 : vector<2x8x1xf32> to vector<2x8x8xf32>
    %101 = arith.subf %97, %100 : vector<2x8x8xf32>
    %102 = math.exp %101 : vector<2x8x8xf32>
    %cst_32 = arith.constant dense<0.000000e+00> : vector<2x8xf32>
    %103 = vector.multi_reduction <add>, %102, %cst_32 [2] : vector<2x8x8xf32> to vector<2x8xf32>
    %104 = vector.shape_cast %103 : vector<2x8xf32> to vector<2x8x1xf32>
    %105 = tpu.reciprocal %104 {approx = true} : vector<2x8x1xf32> -> vector<2x8x1xf32>
    %106 = vector.broadcast %105 : vector<2x8x1xf32> to vector<2x8x8xf32>
    %107 = arith.mulf %102, %106 : vector<2x8x8xf32>
    %108 = arith.truncf %107 : vector<2x8x8xf32> to vector<2x8x8xbf16>
    %109 = vector.extract_strided_slice %51 {offsets = [0, 0, 64], sizes = [2, 8, 32], strides = [1, 1, 1]} : vector<2x8x128xbf16> to vector<2x8x32xbf16>
    "tpu.trace_start"() <{level = 10 : i32, message = "bqk,bkd->bqd"}> : () -> ()
    %cst_33 = arith.constant dense<0.000000e+00> : vector<2x8x32xf32>
    %110 = tpu.matmul %108, %109, %cst_33 {dimension_numbers = #tpu.dot_dimension_numbers<[2], [1], [1], [2], [0, 0, 0, 1, 1, 2], [0], [0]>} : vector<2x8x8xbf16>, vector<2x8x32xbf16>, vector<2x8x32xf32> -> vector<2x8x32xf32>
    "tpu.trace_stop"() : () -> ()
    %111 = arith.truncf %110 : vector<2x8x32xf32> to vector<2x8x32xbf16>
    %112 = vector.extract_strided_slice %45 {offsets = [0, 0, 96], sizes = [2, 8, 32], strides = [1, 1, 1]} : vector<2x8x128xbf16> to vector<2x8x32xbf16>
    %113 = vector.extract_strided_slice %48 {offsets = [0, 0, 96], sizes = [2, 8, 32], strides = [1, 1, 1]} : vector<2x8x128xbf16> to vector<2x8x32xbf16>
    "tpu.trace_start"() <{level = 10 : i32, message = "bqd,bkd->bqk"}> : () -> ()
    %cst_34 = arith.constant dense<0.000000e+00> : vector<2x8x8xf32>
    %114 = tpu.matmul %112, %113, %cst_34 {dimension_numbers = #tpu.dot_dimension_numbers<[2], [2], [1], [1], [0, 0, 0, 1, 1, 1], [0], [0]>} : vector<2x8x32xbf16>, vector<2x8x32xbf16>, vector<2x8x8xf32> -> vector<2x8x8xf32>
    "tpu.trace_stop"() : () -> ()
    %115 = vector.shape_cast %10 : vector<1x8xf32> to vector<1x1x8xf32>
    %116 = vector.broadcast %115 : vector<1x1x8xf32> to vector<2x8x8xf32>
    %117 = arith.addf %114, %116 : vector<2x8x8xf32>
    %cst_35 = arith.constant dense<0xFF800000> : vector<2x8xf32>
    %118 = vector.multi_reduction <maximumf>, %117, %cst_35 [2] : vector<2x8x8xf32> to vector<2x8xf32>
    %119 = vector.shape_cast %118 : vector<2x8xf32> to vector<2x8x1xf32>
    %120 = vector.broadcast %119 : vector<2x8x1xf32> to vector<2x8x8xf32>
    %121 = arith.subf %117, %120 : vector<2x8x8xf32>
    %122 = math.exp %121 : vector<2x8x8xf32>
    %cst_36 = arith.constant dense<0.000000e+00> : vector<2x8xf32>
    %123 = vector.multi_reduction <add>, %122, %cst_36 [2] : vector<2x8x8xf32> to vector<2x8xf32>
    %124 = vector.shape_cast %123 : vector<2x8xf32> to vector<2x8x1xf32>
    %125 = tpu.reciprocal %124 {approx = true} : vector<2x8x1xf32> -> vector<2x8x1xf32>
    %126 = vector.broadcast %125 : vector<2x8x1xf32> to vector<2x8x8xf32>
    %127 = arith.mulf %122, %126 : vector<2x8x8xf32>
    %128 = arith.truncf %127 : vector<2x8x8xf32> to vector<2x8x8xbf16>
    %129 = vector.extract_strided_slice %51 {offsets = [0, 0, 96], sizes = [2, 8, 32], strides = [1, 1, 1]} : vector<2x8x128xbf16> to vector<2x8x32xbf16>
    "tpu.trace_start"() <{level = 10 : i32, message = "bqk,bkd->bqd"}> : () -> ()
    %cst_37 = arith.constant dense<0.000000e+00> : vector<2x8x32xf32>
    %130 = tpu.matmul %128, %129, %cst_37 {dimension_numbers = #tpu.dot_dimension_numbers<[2], [1], [1], [2], [0, 0, 0, 1, 1, 2], [0], [0]>} : vector<2x8x8xbf16>, vector<2x8x32xbf16>, vector<2x8x32xf32> -> vector<2x8x32xf32>
    "tpu.trace_stop"() : () -> ()
    %131 = arith.truncf %130 : vector<2x8x32xf32> to vector<2x8x32xbf16>
    %132 = tpu.concatenate %71, %91, %111, %131 in 2 : vector<2x8x32xbf16>, vector<2x8x32xbf16>, vector<2x8x32xbf16>, vector<2x8x32xbf16> -> vector<2x8x128xbf16>
    %133 = vector.shape_cast %132 : vector<2x8x128xbf16> to vector<16x128xbf16>
    %c0_38 = arith.constant 0 : index
    %c0_39 = arith.constant 0 : index
    %c0_40 = arith.constant 0 : index
    %134 = vector.load %arg9[%c0_38, %c0_39, %c0_40] : memref<1x128x128xbf16, #tpu.memory_space<vmem>>, vector<1x128x128xbf16>
    %135 = vector.shape_cast %134 : vector<1x128x128xbf16> to vector<128x128xbf16>
    %cst_41 = arith.constant dense<0.000000e+00> : vector<16x128xf32>
    %136 = tpu.matmul %133, %135, %cst_41 {dimension_numbers = #tpu.dot_dimension_numbers<[1], [0], [0], [1], [0, 0, 1, 1], [], []>} : vector<16x128xbf16>, vector<128x128xbf16>, vector<16x128xf32> -> vector<16x128xf32>
    %c0_42 = arith.constant 0 : index
    %c0_43 = arith.constant 0 : index
    %c0_44 = arith.constant 0 : index
    %137 = vector.load %arg10[%c0_42, %c0_43, %c0_44] : memref<1x1x128xf32, #tpu.memory_space<vmem>>, vector<1x1x128xf32>
    %138 = vector.shape_cast %137 : vector<1x1x128xf32> to vector<1x128xf32>
    %139 = vector.broadcast %138 : vector<1x128xf32> to vector<16x128xf32>
    %140 = arith.addf %136, %139 : vector<16x128xf32>
    %c0_45 = arith.constant 0 : index
    %c0_46 = arith.constant 0 : index
    %c0_47 = arith.constant 0 : index
    %141 = vector.load %arg11[%c0_45, %c0_46, %c0_47] : memref<1x1x128xf32, #tpu.memory_space<vmem>>, vector<1x1x128xf32>
    %142 = vector.shape_cast %141 : vector<1x1x128xf32> to vector<1x128xf32>
    %143 = vector.broadcast %142 : vector<1x128xf32> to vector<16x128xf32>
    %144 = arith.mulf %143, %140 : vector<16x128xf32>
    %145 = arith.addf %4, %144 : vector<16x128xf32>
    %c0_48 = arith.constant 0 : index
    %c0_49 = arith.constant 0 : index
    %c0_50 = arith.constant 0 : index
    %146 = vector.load %arg12[%c0_48, %c0_49, %c0_50] : memref<1x1x128xf32, #tpu.memory_space<vmem>>, vector<1x1x128xf32>
    %147 = vector.shape_cast %146 : vector<1x1x128xf32> to vector<1x128xf32>
    %c0_51 = arith.constant 0 : index
    %c0_52 = arith.constant 0 : index
    %c0_53 = arith.constant 0 : index
    %148 = vector.load %arg13[%c0_51, %c0_52, %c0_53] : memref<1x1x128xf32, #tpu.memory_space<vmem>>, vector<1x1x128xf32>
    %149 = vector.shape_cast %148 : vector<1x1x128xf32> to vector<1x128xf32>
    %cst_54 = arith.constant dense<0.000000e+00> : vector<16xf32>
    %150 = vector.multi_reduction <add>, %145, %cst_54 [1] : vector<16x128xf32> to vector<16xf32>
    %151 = vector.shape_cast %150 : vector<16xf32> to vector<16x1xf32>
    %cst_55 = arith.constant 1.280000e+02 : f32
    %152 = vector.broadcast %cst_55 : f32 to vector<16x1xf32>
    %153 = arith.divf %151, %152 : vector<16x1xf32>
    %154 = vector.broadcast %153 : vector<16x1xf32> to vector<16x128xf32>
    %155 = arith.subf %145, %154 : vector<16x128xf32>
    %156 = arith.mulf %155, %155 : vector<16x128xf32>
    %cst_56 = arith.constant dense<0.000000e+00> : vector<16xf32>
    %157 = vector.multi_reduction <add>, %156, %cst_56 [1] : vector<16x128xf32> to vector<16xf32>
    %158 = vector.shape_cast %157 : vector<16xf32> to vector<16x1xf32>
    %cst_57 = arith.constant 1.280000e+02 : f32
    %159 = vector.broadcast %cst_57 : f32 to vector<16x1xf32>
    %160 = arith.divf %158, %159 : vector<16x1xf32>
    %cst_58 = arith.constant 9.99999997E-7 : f32
    %161 = vector.broadcast %cst_58 : f32 to vector<16x1xf32>
    %162 = arith.addf %160, %161 : vector<16x1xf32>
    %163 = math.rsqrt %162 : vector<16x1xf32>
    %164 = vector.broadcast %163 : vector<16x1xf32> to vector<16x128xf32>
    %165 = arith.mulf %155, %164 : vector<16x128xf32>
    %166 = vector.broadcast %147 : vector<1x128xf32> to vector<16x128xf32>
    %167 = arith.mulf %165, %166 : vector<16x128xf32>
    %168 = vector.broadcast %149 : vector<1x128xf32> to vector<16x128xf32>
    %169 = arith.addf %167, %168 : vector<16x128xf32>
    %170 = arith.truncf %169 : vector<16x128xf32> to vector<16x128xbf16>
    %c0_59 = arith.constant 0 : index
    %c0_60 = arith.constant 0 : index
    %c0_61 = arith.constant 0 : index
    %171 = vector.load %arg14[%c0_59, %c0_60, %c0_61] : memref<1x128x512xbf16, #tpu.memory_space<vmem>>, vector<1x128x512xbf16>
    %172 = vector.shape_cast %171 : vector<1x128x512xbf16> to vector<128x512xbf16>
    %cst_62 = arith.constant dense<0.000000e+00> : vector<16x512xf32>
    %173 = tpu.matmul %170, %172, %cst_62 {dimension_numbers = #tpu.dot_dimension_numbers<[1], [0], [0], [1], [0, 0, 1, 1], [], []>} : vector<16x128xbf16>, vector<128x512xbf16>, vector<16x512xf32> -> vector<16x512xf32>
    %c0_63 = arith.constant 0 : index
    %c0_64 = arith.constant 0 : index
    %c0_65 = arith.constant 0 : index
    %174 = vector.load %arg15[%c0_63, %c0_64, %c0_65] : memref<1x1x512xf32, #tpu.memory_space<vmem>>, vector<1x1x512xf32>
    %175 = vector.shape_cast %174 : vector<1x1x512xf32> to vector<1x512xf32>
    %176 = vector.broadcast %175 : vector<1x512xf32> to vector<16x512xf32>
    %177 = arith.addf %173, %176 : vector<16x512xf32>
    %178 = arith.mulf %177, %177 : vector<16x512xf32>
    %179 = arith.mulf %177, %178 : vector<16x512xf32>
    %cst_66 = arith.constant 4.471500e-02 : f32
    %180 = vector.broadcast %cst_66 : f32 to vector<16x512xf32>
    %181 = arith.mulf %180, %179 : vector<16x512xf32>
    %182 = arith.addf %177, %181 : vector<16x512xf32>
    %cst_67 = arith.constant 0.797884583 : f32
    %183 = vector.broadcast %cst_67 : f32 to vector<16x512xf32>
    %184 = arith.mulf %183, %182 : vector<16x512xf32>
    %185 = math.tanh %184 : vector<16x512xf32>
    %cst_68 = arith.constant 1.000000e+00 : f32
    %186 = vector.broadcast %cst_68 : f32 to vector<16x512xf32>
    %187 = arith.addf %186, %185 : vector<16x512xf32>
    %cst_69 = arith.constant 5.000000e-01 : f32
    %188 = vector.broadcast %cst_69 : f32 to vector<16x512xf32>
    %189 = arith.mulf %188, %187 : vector<16x512xf32>
    %190 = arith.mulf %177, %189 : vector<16x512xf32>
    %191 = arith.truncf %190 : vector<16x512xf32> to vector<16x512xbf16>
    %c0_70 = arith.constant 0 : index
    %c0_71 = arith.constant 0 : index
    %c0_72 = arith.constant 0 : index
    %192 = vector.load %arg16[%c0_70, %c0_71, %c0_72] : memref<1x512x128xbf16, #tpu.memory_space<vmem>>, vector<1x512x128xbf16>
    %193 = vector.shape_cast %192 : vector<1x512x128xbf16> to vector<512x128xbf16>
    %cst_73 = arith.constant dense<0.000000e+00> : vector<16x128xf32>
    %194 = tpu.matmul %191, %193, %cst_73 {dimension_numbers = #tpu.dot_dimension_numbers<[1], [0], [0], [1], [0, 0, 1, 1], [], []>} : vector<16x512xbf16>, vector<512x128xbf16>, vector<16x128xf32> -> vector<16x128xf32>
    %c0_74 = arith.constant 0 : index
    %c0_75 = arith.constant 0 : index
    %c0_76 = arith.constant 0 : index
    %195 = vector.load %arg17[%c0_74, %c0_75, %c0_76] : memref<1x1x128xf32, #tpu.memory_space<vmem>>, vector<1x1x128xf32>
    %196 = vector.shape_cast %195 : vector<1x1x128xf32> to vector<1x128xf32>
    %197 = vector.broadcast %196 : vector<1x128xf32> to vector<16x128xf32>
    %198 = arith.addf %194, %197 : vector<16x128xf32>
    %c0_77 = arith.constant 0 : index
    %c0_78 = arith.constant 0 : index
    %c0_79 = arith.constant 0 : index
    %199 = vector.load %arg18[%c0_77, %c0_78, %c0_79] : memref<1x1x128xf32, #tpu.memory_space<vmem>>, vector<1x1x128xf32>
    %200 = vector.shape_cast %199 : vector<1x1x128xf32> to vector<1x128xf32>
    %201 = vector.broadcast %200 : vector<1x128xf32> to vector<16x128xf32>
    %202 = arith.mulf %201, %198 : vector<16x128xf32>
    %203 = arith.addf %145, %202 : vector<16x128xf32>
    %204 = vector.shape_cast %203 : vector<16x128xf32> to vector<2x8x128xf32>
    %c0_80 = arith.constant 0 : index
    %c0_81 = arith.constant 0 : index
    %c0_82 = arith.constant 0 : index
    %205 = vector.load %arg22[%c0_80, %c0_81, %c0_82] : memref<2x8x128xf32, #tpu.memory_space<vmem>>, vector<2x8x128xf32>
    tpu.vector_store %arg22[%c0_80, %c0_81, %c0_82], %204 {strides = array<i32>} : memref<2x8x128xf32, #tpu.memory_space<vmem>>, vector<2x8x128xf32>,
    %c1_i32 = arith.constant 1 : i32
    %206 = arith.cmpi eq, %arg1, %c1_i32 : i32
    %207 = arith.extui %206 : i1 to i32
    %c0_i32_83 = arith.constant 0 : i32
    %208 = arith.cmpi ne, %207, %c0_i32_83 : i32
    scf.if %208 {
      %209 = vector.extract_strided_slice %204 {offsets = [0, 0, 0], sizes = [2, 1, 128], strides = [1, 1, 1]} : vector<2x8x128xf32> to vector<2x1x128xf32>
      %c0_84 = arith.constant 0 : index
      %c0_85 = arith.constant 0 : index
      %210 = vector.load %arg19[%c0_84, %c0_85] : memref<1x128xf32, #tpu.memory_space<vmem>>, vector<1x128xf32>
      %c0_86 = arith.constant 0 : index
      %c0_87 = arith.constant 0 : index
      %211 = vector.load %arg20[%c0_86, %c0_87] : memref<1x128xf32, #tpu.memory_space<vmem>>, vector<1x128xf32>
      %cst_88 = arith.constant dense<0.000000e+00> : vector<2x1xf32>
      %212 = vector.multi_reduction <add>, %209, %cst_88 [2] : vector<2x1x128xf32> to vector<2x1xf32>
      %213 = vector.shape_cast %212 : vector<2x1xf32> to vector<2x1x1xf32>
      %cst_89 = arith.constant 1.280000e+02 : f32
      %214 = vector.broadcast %cst_89 : f32 to vector<2x1x1xf32>
      %215 = arith.divf %213, %214 : vector<2x1x1xf32>
      %216 = vector.broadcast %215 : vector<2x1x1xf32> to vector<2x1x128xf32>
      %217 = arith.subf %209, %216 : vector<2x1x128xf32>
      %218 = arith.mulf %217, %217 : vector<2x1x128xf32>
      %cst_90 = arith.constant dense<0.000000e+00> : vector<2x1xf32>
      %219 = vector.multi_reduction <add>, %218, %cst_90 [2] : vector<2x1x128xf32> to vector<2x1xf32>
      %220 = vector.shape_cast %219 : vector<2x1xf32> to vector<2x1x1xf32>
      %cst_91 = arith.constant 1.280000e+02 : f32
      %221 = vector.broadcast %cst_91 : f32 to vector<2x1x1xf32>
      %222 = arith.divf %220, %221 : vector<2x1x1xf32>
      %cst_92 = arith.constant 9.99999997E-7 : f32
      %223 = vector.broadcast %cst_92 : f32 to vector<2x1x1xf32>
      %224 = arith.addf %222, %223 : vector<2x1x1xf32>
      %225 = math.rsqrt %224 : vector<2x1x1xf32>
      %226 = vector.broadcast %225 : vector<2x1x1xf32> to vector<2x1x128xf32>
      %227 = arith.mulf %217, %226 : vector<2x1x128xf32>
      %228 = vector.shape_cast %210 : vector<1x128xf32> to vector<1x1x128xf32>
      %229 = vector.broadcast %228 : vector<1x1x128xf32> to vector<2x1x128xf32>
      %230 = arith.mulf %227, %229 : vector<2x1x128xf32>
      %231 = vector.shape_cast %211 : vector<1x128xf32> to vector<1x1x128xf32>
      %232 = vector.broadcast %231 : vector<1x1x128xf32> to vector<2x1x128xf32>
      %233 = arith.addf %230, %232 : vector<2x1x128xf32>
      %c0_93 = arith.constant 0 : index
      %c0_94 = arith.constant 0 : index
      %c0_95 = arith.constant 0 : index
      %234 = vector.load %arg21[%c0_93, %c0_94, %c0_95] : memref<2x1x128xf32, #tpu.memory_space<vmem>>, vector<2x1x128xf32>
      tpu.vector_store %arg21[%c0_93, %c0_94, %c0_95], %233 {strides = array<i32>} : memref<2x1x128xf32, #tpu.memory_space<vmem>>, vector<2x1x128xf32>,
    } else {
    }
    return
  }
  func.func @transform_0(%arg0: i32, %arg1: i32) -> (i32, i32, i32) {
    %c0_i32 = arith.constant 0 : i32
    %c0_i32_0 = arith.constant 0 : i32
    %c0_i32_1 = arith.constant 0 : i32
    return %arg0, %c0_i32, %c0_i32_0 : i32, i32, i32
  }
  func.func @transform_1(%arg0: i32, %arg1: i32) -> (i32, i32) {
    %c0_i32 = arith.constant 0 : i32
    %c0_i32_0 = arith.constant 0 : i32
    %c0_i32_1 = arith.constant 0 : i32
    return %c0_i32, %c0_i32_0 : i32, i32
  }
  func.func @transform_2(%arg0: i32, %arg1: i32) -> (i32, i32, i32) {
    %c0_i32 = arith.constant 0 : i32
    %c0_i32_0 = arith.constant 0 : i32
    %c0_i32_1 = arith.constant 0 : i32
    %c0_i32_2 = arith.constant 0 : i32
    return %c0_i32, %c0_i32_0, %c0_i32_1 : i32, i32, i32
  }
  func.func @transform_3(%arg0: i32, %arg1: i32) -> (i32, i32, i32) {
    %c0_i32 = arith.constant 0 : i32
    %c0_i32_0 = arith.constant 0 : i32
    %c0_i32_1 = arith.constant 0 : i32
    return %arg1, %c0_i32, %c0_i32_0 : i32, i32, i32
  }
  func.func @transform_4(%arg0: i32, %arg1: i32) -> (i32, i32, i32) {
    %c0_i32 = arith.constant 0 : i32
    %c0_i32_0 = arith.constant 0 : i32
    %c0_i32_1 = arith.constant 0 : i32
    return %arg1, %c0_i32, %c0_i32_0 : i32, i32, i32
  }
  func.func @transform_5(%arg0: i32, %arg1: i32) -> (i32, i32, i32) {
    %c0_i32 = arith.constant 0 : i32
    %c0_i32_0 = arith.constant 0 : i32
    %c0_i32_1 = arith.constant 0 : i32
    return %arg1, %c0_i32, %c0_i32_0 : i32, i32, i32
  }
  func.func @transform_6(%arg0: i32, %arg1: i32) -> (i32, i32, i32) {
    %c0_i32 = arith.constant 0 : i32
    %c0_i32_0 = arith.constant 0 : i32
    %c0_i32_1 = arith.constant 0 : i32
    return %arg1, %c0_i32, %c0_i32_0 : i32, i32, i32
  }
  func.func @transform_7(%arg0: i32, %arg1: i32) -> (i32, i32, i32) {
    %c0_i32 = arith.constant 0 : i32
    %c0_i32_0 = arith.constant 0 : i32
    %c0_i32_1 = arith.constant 0 : i32
    return %arg1, %c0_i32, %c0_i32_0 : i32, i32, i32
  }
  func.func @transform_8(%arg0: i32, %arg1: i32) -> (i32, i32, i32) {
    %c0_i32 = arith.constant 0 : i32
    %c0_i32_0 = arith.constant 0 : i32
    %c0_i32_1 = arith.constant 0 : i32
    return %arg1, %c0_i32, %c0_i32_0 : i32, i32, i32
  }
  func.func @transform_9(%arg0: i32, %arg1: i32) -> (i32, i32, i32) {
    %c0_i32 = arith.constant 0 : i32
    %c0_i32_0 = arith.constant 0 : i32
    %c0_i32_1 = arith.constant 0 : i32
    return %arg1, %c0_i32, %c0_i32_0 : i32, i32, i32
  }
  func.func @transform_10(%arg0: i32, %arg1: i32) -> (i32, i32, i32) {
    %c0_i32 = arith.constant 0 : i32
    %c0_i32_0 = arith.constant 0 : i32
    %c0_i32_1 = arith.constant 0 : i32
    return %arg1, %c0_i32, %c0_i32_0 : i32, i32, i32
  }
  func.func @transform_11(%arg0: i32, %arg1: i32) -> (i32, i32, i32) {
    %c0_i32 = arith.constant 0 : i32
    %c0_i32_0 = arith.constant 0 : i32
    %c0_i32_1 = arith.constant 0 : i32
    return %arg1, %c0_i32, %c0_i32_0 : i32, i32, i32
  }
  func.func @transform_12(%arg0: i32, %arg1: i32) -> (i32, i32, i32) {
    %c0_i32 = arith.constant 0 : i32
    %c0_i32_0 = arith.constant 0 : i32
    %c0_i32_1 = arith.constant 0 : i32
    return %arg1, %c0_i32, %c0_i32_0 : i32, i32, i32
  }
  func.func @transform_13(%arg0: i32, %arg1: i32) -> (i32, i32, i32) {
    %c0_i32 = arith.constant 0 : i32
    %c0_i32_0 = arith.constant 0 : i32
    %c0_i32_1 = arith.constant 0 : i32
    return %arg1, %c0_i32, %c0_i32_0 : i32, i32, i32
  }
  func.func @transform_14(%arg0: i32, %arg1: i32) -> (i32, i32, i32) {
    %c0_i32 = arith.constant 0 : i32
    %c0_i32_0 = arith.constant 0 : i32
    %c0_i32_1 = arith.constant 0 : i32
    return %arg1, %c0_i32, %c0_i32_0 : i32, i32, i32
  }
  func.func @transform_15(%arg0: i32, %arg1: i32) -> (i32, i32, i32) {
    %c0_i32 = arith.constant 0 : i32
    %c0_i32_0 = arith.constant 0 : i32
    %c0_i32_1 = arith.constant 0 : i32
    return %arg1, %c0_i32, %c0_i32_0 : i32, i32, i32
  }
  func.func @transform_16(%arg0: i32, %arg1: i32) -> (i32, i32, i32) {
    %c0_i32 = arith.constant 0 : i32
    %c0_i32_0 = arith.constant 0 : i32
    %c0_i32_1 = arith.constant 0 : i32
    return %arg1, %c0_i32, %c0_i32_0 : i32, i32, i32
  }
  func.func @transform_17(%arg0: i32, %arg1: i32) -> (i32, i32) {
    %c0_i32 = arith.constant 0 : i32
    %c0_i32_0 = arith.constant 0 : i32
    %c0_i32_1 = arith.constant 0 : i32
    return %c0_i32, %c0_i32_0 : i32, i32
  }
  func.func @transform_18(%arg0: i32, %arg1: i32) -> (i32, i32) {
    %c0_i32 = arith.constant 0 : i32
    %c0_i32_0 = arith.constant 0 : i32
    %c0_i32_1 = arith.constant 0 : i32
    return %c0_i32, %c0_i32_0 : i32, i32
  }
  func.func @transform_19(%arg0: i32, %arg1: i32) -> (i32, i32, i32) {
    %c0_i32 = arith.constant 0 : i32
    %c0_i32_0 = arith.constant 0 : i32
    %c0_i32_1 = arith.constant 0 : i32
    return %arg0, %c0_i32, %c0_i32_0 : i32, i32, i32
  }
}

</mosaic_0001>

<bundles_post_ra>
// kernel: _lambda_.2
= control target key start
LH: loop header
LB: loop body
LE: loop exit
PB: predicated region body
PF: predicated region fallthrough
CT: control target
= control target key end

     0   :  { %s1097_s18 = smov 0   ;;  %s1288_s0 = inlined_call_operand.vmem [shape: f32[4,4,768], index: 0, kind: input, shape index: {}]   ;;  %s1289_s1 = inlined_call_operand.vmem [shape: f32[1,768], index: 1, kind: input, shape index: {}]   ;;  %s1290_s2 = inlined_call_operand.vmem [shape: f32[1,768], index: 2, kind: input, shape index: {}]   ;;  %s1291_s3 = inlined_call_operand.vmem [shape: bf16[768,128], index: 3, kind: input, shape index: {}]   ;;  %s1292_s4 = inlined_call_operand.vmem [shape: f32[1,128], index: 4, kind: input, shape index: {}]   ;;  %s1293_s5 = inlined_call_operand.vmem [shape: bf16[4,4,128], index: 5, kind: output, shape index: {}]  }
   0x1 LB: > { %s878_s19 = sadd.s32 4294967295, %s1065_s18   ;;  %p882_p0 = scmp.ge.s32.totalorder %s1065_s18, 1  ;;  %s1065_s18 = sphi %s1097_s18, %s15_s18  }
   0x2   : > { %p187_p1 = scmp.lt.s32.totalorder %s1065_s18, 5 }
   0x4   : > { %p188_p2 = pnand %p882_p0, %p187_p1 }
   0x5   : > { %v1011_v0 = vld [vmem:[%s1291_s3 + $0x40] sm:$0xff] (!%p188_p2)   ;;  %v1015_v4 = vld [vmem:[%s1291_s3 + $0x48] sm:$0xff] (!%p188_p2)   ;;  %v1019_v8 = vld [vmem:[%s1291_s3 + $0x50] sm:$0xff] (!%p188_p2)   ;;  %p214_p3 = scmp.lt.s32.totalorder (!%p188_p2), %s878_s19, 3  ;;  %v229_v19 = vlaneseq (!%p188_p2) }
   0x6   : > { %191 = sbr.rel (%p188_p2) target bundleno = 290 (0x122), region = 40  ;;  %v1012_v1 = vld [vmem:[%s1291_s3] sm:$0xff] (!%p188_p2)   ;;  %936 = vmatprep.subr.bf16.mxu0 (!%p188_p2), %v1011_v0  ;;  %v1016_v5 = vld [vmem:[%s1291_s3 + $0x8] sm:$0xff] (!%p188_p2)   ;;  %v1020_v9 = vld [vmem:[%s1291_s3 + $0x10] sm:$0xff] (!%p188_p2)  }
   0x7   : > { %v1013_v2 = vld [vmem:[%s1291_s3 + $0xc0] sm:$0xff] (!%p188_p2)   ;;  %937 = vmatpush3.bf16.msra.mxu0 (!%p188_p2), %v1012_v1  ;;  %v1017_v6 = vld [vmem:[%s1291_s3 + $0xc8] sm:$0xff] (!%p188_p2)   ;;  %v1021_v10 = vld [vmem:[%s1291_s3 + $0xd0] sm:$0xff] (!%p188_p2)   ;;  %v1180_v24 = vshrl.u32 (!%p188_p2), %v229_v19, 7 }
   0x8   : > { %v1014_v3 = vld [vmem:[%s1291_s3 + $0x80] sm:$0xff] (!%p188_p2)   ;;  %958 = vmatprep.subr.bf16.mxu1 (!%p188_p2), %v1013_v2  ;;  %938 = vmatprep.subr.bf16.mxu0 (!%p188_p2), %v1015_v4  ;;  %v1018_v7 = vld [vmem:[%s1291_s3 + $0x88] sm:$0xff] (!%p188_p2)   ;;  %v1022_v11 = vld [vmem:[%s1291_s3 + $0x90] sm:$0xff] (!%p188_p2)  }
   0x9   : > { %959 = vmatpush3.bf16.msra.mxu1 (!%p188_p2), %v1014_v3  ;;  %v1023_v12 = vld [vmem:[%s1291_s3 + $0x58] sm:$0xff] (!%p188_p2)   ;;  %v1027_v16 = vld [vmem:[%s1291_s3 + $0x60] sm:$0xff] (!%p188_p2)   ;;  %v1031_v21 = vld [vmem:[%s1291_s3 + $0x68] sm:$0xff] (!%p188_p2)   ;;  %v231_v29 = vsub.s32 (!%p188_p2), 0, %v1180_v24  ;;  %v235_v31 = vsub.s32 (!%p188_p2), 1, %v1180_v24  ;;  %v239_v33 = vsub.s32 (!%p188_p2), 2, %v1180_v24 }
   0xa   : > { %960 = vmatprep.subr.bf16.mxu1 (!%p188_p2), %v1017_v6  ;;  %v1024_v13 = vld [vmem:[%s1291_s3 + $0x18] sm:$0xff] (!%p188_p2)   ;;  %v1028_v17 = vld [vmem:[%s1291_s3 + $0x20] sm:$0xff] (!%p188_p2)   ;;  %v1032_v22 = vld [vmem:[%s1291_s3 + $0x28] sm:$0xff] (!%p188_p2)   ;;  %v243_v35 = vsub.s32 (!%p188_p2), 3, %v1180_v24  ;;  %v247_v58 = vsub.s32 (!%p188_p2), 4, %v1180_v24  ;;  %v251_v59 = vsub.s32 (!%p188_p2), 5, %v1180_v24 }
   0xb   : > { %939 = vmatpush3.bf16.msra.mxu0 (!%p188_p2), %v1016_v5  ;;  %v1025_v14 = vld [vmem:[%s1291_s3 + $0xd8] sm:$0xff] (!%p188_p2)   ;;  %v1029_v18 = vld [vmem:[%s1291_s3 + $0xe0] sm:$0xff] (!%p188_p2)   ;;  %v1033_v23 = vld [vmem:[%s1291_s3 + $0xe8] sm:$0xff] (!%p188_p2)  }
   0xc   : > { %940 = vmatprep.subr.bf16.mxu0 (!%p188_p2), %v1019_v8  ;;  %v1026_v15 = vld [vmem:[%s1291_s3 + $0x98] sm:$0xff] (!%p188_p2)   ;;  %v1030_v20 = vld [vmem:[%s1291_s3 + $0xa0] sm:$0xff] (!%p188_p2)   ;;  %v1034_v25 = vld [vmem:[%s1291_s3 + $0xa8] sm:$0xff] (!%p188_p2)  }
   0xd   : > { %961 = vmatpush3.bf16.msra.mxu1 %v1018_v7  ;;  %s1295_s19 = smov (!%p214_p3, %s878_s19), 3  ;;  %v1035_v26 = vld [vmem:[%s1291_s3 + $0x70] sm:$0xff]   ;;  %v1039_v32 = vld [vmem:[%s1291_s3 + $0x78] sm:$0xff]   ;;  %v227_v38 = vld [vmem:[%s1289_s1] sm:$0x3f] }
   0xe   : > { %962 = vmatprep.subr.bf16.mxu1 %v1021_v10  ;;  %s1002_s24 = smul.u32 24, %s1295_s19  ;;  %v1036_v27 = vld [vmem:[%s1291_s3 + $0x30] sm:$0xff]   ;;  %v1040_v34 = vld [vmem:[%s1291_s3 + $0x38] sm:$0xff]   ;;  %v262_v39 = vld [vmem:[%s1290_s2] sm:$0x3f]  ;;  %v232_v40 = vrot.slane %v227_v38, %v231_v29  ;;  %v236_v41 = vrot.slane %v227_v38, %v235_v31  ;;  %v240_v46 = vrot.slane %v227_v38, %v239_v33  ;;  %v244_v47 = vrot.slane %v227_v38, %v243_v35  ;;  %s884_s9 = sshll.u32 %s1295_s19, 1 }
   0xf   : > { %941 = vmatpush3.bf16.msra.mxu0 %v1020_v9  ;;  %v1037_v28 = vld [vmem:[%s1291_s3 + $0xf0] sm:$0xff]   ;;  %v1041_v36 = vld [vmem:[%s1291_s3 + $0xf8] sm:$0xff]   ;;  %v267_v42 = vrot.slane %v262_v39, %v231_v29  ;;  %v271_v43 = vrot.slane %v262_v39, %v235_v31  ;;  %v1043_v45 = vld [vmem:[%s1291_s3 + $0x140] sm:$0xff]   ;;  %v275_v48 = vrot.slane %v262_v39, %v239_v33  ;;  %v279_v49 = vrot.slane %v262_v39, %v243_v35  ;;  %s222_s13 = scalar_lea.vmem %s1293_s5, %s884_s9 }
  0x10   : > { %942 = vmatprep.subr.bf16.mxu0 %v1023_v12  ;;  %v1038_v30 = vld [vmem:[%s1291_s3 + $0xb0] sm:$0xff]   ;;  %s1206_s10 = scalar_lea.vmem %s1288_s0, %s1002_s24  ;;  %v1042_v44 = vld [vmem:[%s1291_s3 + $0xb8] sm:$0xff]   ;;  %v253_v50 = vcombine.low %v232_v40, %v236_v41  ;;  %v254_v53 = vcombine.low %v240_v46, %v244_v47  ;;  %v1044_v1 = vld [vmem:[%s1291_s3 + $0x100] sm:$0xff]   ;;  %v248_v3 = vrot.slane %v227_v38, %v247_v58  ;;  %v252_v4 = vrot.slane %v227_v38, %v251_v59 }
  0x11   : > { %963 = vmatpush3.bf16.msra.mxu1 %v1022_v11  ;;  %v224_v37 = vld [vmem:[%s1206_s10] sm:$0xff]  ;;  %v288_v51 = vcombine.low %v267_v42, %v271_v43  ;;  %v225_v52 = vld [vmem:[%s1206_s10 + $0x8] sm:$0xff]  ;;  %v289_v54 = vcombine.low %v275_v48, %v279_v49  ;;  %v283_v7 = vrot.slane %v262_v39, %v247_v58  ;;  %v287_v8 = vrot.slane %v262_v39, %v251_v59  ;;  %v1047_v11 = vld [vmem:[%s1291_s3 + $0x150] sm:$0xff]  }
  0x12   : > { %964 = vmatprep.subr.bf16.mxu1 %v1025_v14  ;;  %v259_v55 = vsub.f32 %v224_v37, %v253_v50  ;;  %v260_v56 = vsub.f32 %v225_v52, %v254_v53  ;;  %v1045_v6 = vld [vmem:[%s1291_s3 + $0x148] sm:$0xff]   ;;  %v255_v10 = vcombine.low %v248_v3, %v252_v4  ;;  %v1048_v14 = vld [vmem:[%s1291_s3 + $0x110] sm:$0xff]   ;;  %v885_v31 = vld [vmem:[%s1292_s4] ss:$0 sm:$0xff] }
  0x13   : > { %943 = vmatpush3.bf16.msra.mxu0 %v1024_v13  ;;  %v1046_v9 = vld [vmem:[%s1291_s3 + $0x108] sm:$0xff]   ;;  %v290_v12 = vcombine.low %v283_v7, %v287_v8  ;;  %v226_v13 = vld [vmem:[%s1206_s10 + $0x10] sm:$0xff] }
  0x14   : > { %944 = vmatprep.subr.bf16.mxu0 %v1027_v16  ;;  %v294_v57 = vmul.f32 %v288_v51, %v259_v55  ;;  %v295_v60 = vmul.f32 %v289_v54, %v260_v56  ;;  %v1049_v16 = vld [vmem:[%s1291_s3 + $0x158] sm:$0xff]   ;;  %v1054_v24 = vld [vmem:[%s1291_s3 + $0x128] sm:$0xff]  }
  0x15   : > { %965 = vmatpush3.bf16.msra.mxu1 %v1026_v15  ;;  %v261_v15 = vsub.f32 %v226_v13, %v255_v10 }
  0x16   : > { %966 = vmatprep.subr.bf16.mxu1 %v1029_v18  ;;  %v300_v61 = vcombine.high %v294_v57, %v294_v57  ;;  %v306_v62 = vpack.c.bf16 %v294_v57, %v294_v57  ;;  %v301_v63 = vcombine.high %v295_v60, %v295_v60  ;;  %v308_v2 = vpack.c.bf16 %v295_v60, %v295_v60  ;;  %v1050_v18 = vld [vmem:[%s1291_s3 + $0x118] sm:$0xff]  }
  0x17   : > { %945 = vmatpush3.bf16.msra.mxu0 %v1028_v17  ;;  %v296_v17 = vmul.f32 %v290_v12, %v261_v15 }
  0x18   : > { %946 = vmatprep.subr.bf16.mxu0 %v1031_v21  ;;  %v307_v0 = vpack.c.bf16 %v300_v61, %v300_v61  ;;  %v309_v5 = vpack.c.bf16 %v301_v63, %v301_v63 }
  0x19   : > { %967 = vmatpush3.bf16.msra.mxu1 %v1030_v20  ;;  %v302_v19 = vcombine.high %v296_v17, %v296_v17  ;;  %v1051_v20 = vld [vmem:[%s1291_s3 + $0x160] sm:$0xff]   ;;  %v310_v29 = vpack.c.bf16 %v296_v17, %v296_v17 }
  0x1a   : > { %968 = vmatprep.subr.bf16.mxu1 %v1033_v23  ;;  %735 = vmatprep.mubr.bf16.mxu0 %v307_v0  ;;  %v1053_v23 = vld [vmem:[%s1291_s3 + $0x168] sm:$0xff]  }
  0x1b   : > { %947 = vmatpush3.bf16.msra.mxu0 %v1032_v22  ;;  %775 = vmatprep.mubr.bf16.mxu1 %v309_v5  ;;  %v311_v21 = vpack.c.bf16 %v302_v19, %v302_v19  ;;  %v1052_v22 = vld [vmem:[%s1291_s3 + $0x120] sm:$0xff]  }
  0x1c   : > { %948 = vmatprep.subr.bf16.mxu0 %v1035_v26  ;;  %v1056_v26 = vld [vmem:[%s1291_s3 + $0x130] sm:$0xff]  }
  0x1d   : > { %969 = vmatpush3.bf16.msra.mxu1 %v1034_v25  ;;  %v1055_v25 = vld [vmem:[%s1291_s3 + $0x170] sm:$0xff]  }
  0x1e   : > { %970 = vmatprep.subr.bf16.mxu1 %v1037_v28  ;;  %v1058_v28 = vld [vmem:[%s1291_s3 + $0x138] sm:$0xff]  }
  0x1f   : > { %949 = vmatpush3.bf16.msra.mxu0 %v1036_v27  ;;  %v1057_v27 = vld [vmem:[%s1291_s3 + $0x178] sm:$0xff]  }
  0x20   : > { %950 = vmatprep.subr.bf16.mxu0 %v1039_v32 }
  0x21   : > { %971 = vmatpush3.bf16.msra.mxu1 %v1038_v30 }
  0x22   : > { %972 = vmatprep.subr.bf16.mxu1 %v1041_v36 }
  0x23   : > { %951 = vmatpush3.bf16.msra.mxu0 %v1040_v34 }
  0x24   : > { %980 = vmatprep.subr.bf16.mxu0 %v1043_v45 }
  0x25   : > { %973 = vmatpush3.bf16.msra.mxu1 %v1042_v44 }
  0x26   : > { %736 = vmatmul.mubr.bf16.vlgmr.msra.gmra.mrb[0].mxu0 %v306_v62 }
  0x27   : > { %981 = vmatpush3.bf16.msra.mxu0 %v1044_v1  ;;  %815 = vmatprep.mubr.bf16.mxu0 %v311_v21 }
  0x28   : > { %776 = vmatmul.mubr.bf16.vlgmr.msra.gmra.mrb[0].mxu1 %v308_v2  ;;  %982 = vmatprep.subr.bf16.mxu0 %v1045_v6 }
  0x2b   : > { %983 = vmatpush3.bf16.msra.mxu0 %v1046_v9 }
  0x2c   : > { %984 = vmatprep.subr.bf16.mxu0 %v1047_v11 }
  0x2f   : > { %985 = vmatpush3.bf16.msra.mxu0 %v1048_v14 }
  0x30   : > { %986 = vmatprep.subr.bf16.mxu0 %v1049_v16 }
  0x33   : > { %987 = vmatpush3.bf16.msra.mxu0 %v1050_v18 }
  0x34   : > { %988 = vmatprep.subr.bf16.mxu0 %v1051_v20 }
  0x37   : > { %989 = vmatpush3.bf16.msra.mxu0 %v1052_v22 }
  0x38   : > { %990 = vmatprep.subr.bf16.mxu0 %v1053_v23 }
  0x3b   : > { %991 = vmatpush3.bf16.msra.mxu0 %v1054_v24 }
  0x3c   : > { %992 = vmatprep.subr.bf16.mxu0 %v1055_v25 }
  0x3f   : > { %993 = vmatpush3.bf16.msra.mxu0 %v1056_v26 }
  0x40   : > { %994 = vmatprep.subr.bf16.mxu0 %v1057_v27 }
  0x43   : > { %995 = vmatpush3.bf16.msra.mxu0 %v1058_v28 }
  0x46   : > { %816 = vmatmul.mubr.bf16.vlgmr.msra.gmra.mrb[4].mxu0 %v310_v29 }
  0xf9   : > { %v952_v30 = vpop.f32.mrb[0].mxu0 }
  0xfa   : > { %v953_v32 = vpop.f32.mrb[1].mxu0 }
  0xfb   : > { %v974_v33 = vpop.f32.mrb[0].mxu1  ;;  %v954_v34 = vadd.f32 %v953_v32, %v952_v30  ;;  %v955_v35 = vpop.f32.mrb[2].mxu0 }
  0xfc   : > { %v975_v36 = vpop.f32.mrb[1].mxu1  ;;  %v956_v37 = vpop.f32.mrb[3].mxu0 }
  0xfd   : > { %v976_v38 = vadd.f32 %v975_v36, %v974_v33  ;;  %v977_v39 = vpop.f32.mrb[2].mxu1  ;;  %v738_v40 = vadd.f32 %v954_v34, %v885_v31 }
  0xfe   : > { %v978_v41 = vpop.f32.mrb[3].mxu1 }
  0xff   : > { %v778_v42 = vadd.f32 %v976_v38, %v738_v40 }
 0x119   : > { %v996_v43 = vpop.f32.mrb[4].mxu0 }
 0x11a   : > { %v997_v44 = vpop.f32.mrb[5].mxu0 }
 0x11b   : > { %v998_v45 = vadd.f32 %v997_v44, %v996_v43  ;;  %v999_v46 = vpop.f32.mrb[6].mxu0 }
 0x11c   : > { %v1000_v47 = vpop.f32.mrb[7].mxu0 }
 0x11d   : > { %v818_v48 = vadd.f32 %v998_v45, %v778_v42 }
 0x11f   : > { %v823_v49 = vpack.c.bf16 %v818_v48, %v818_v48 }
 0x121   : > { %824 = vst [vmem:[%s222_s13] sm:$0x3] %v823_v49 }
 0x122 PF: > { %s15_s18 = sadd.s32 1, %s1065_s18  }
 0x123   : > { %p12_p4 = scmp.ge.s32.totalorder %s15_s18, 6  }
 0x125   :  { %14 = sbr.rel (!%p12_p4) target bundleno = 1 (0x1), region = 70 }

// kernel: _lambda_.3
= control target key start
LH: loop header
LB: loop body
LE: loop exit
PB: predicated region body
PF: predicated region fallthrough
CT: control target
= control target key end

     0   :  { %s4831_s0 = inlined_call_operand.vmem [shape: bf16[4,4,128], index: 0, kind: input, shape index: {}]   ;;  %s4832_s1 = inlined_call_operand.vmem [shape: f32[1,128], index: 1, kind: input, shape index: {}]   ;;  %s4833_s2 = inlined_call_operand.vmem [shape: f32[1,5,128], index: 2, kind: input, shape index: {}]   ;;  %s4834_s3 = inlined_call_operand.vmem [shape: f32[2,1,128], index: 3, kind: input, shape index: {}, may-alias: {3,10}]   ;;  %s4835_s4 = inlined_call_operand.vmem [shape: f32[2,1,128], index: 4, kind: input, shape index: {}, may-alias: {4,8,11,15}]   ;;  %s4836_s5 = inlined_call_operand.vmem [shape: bf16[2,128,384], index: 5, kind: input, shape index: {}]   ;;  %s4837_s6 = inlined_call_operand.vmem [shape: f32[2,1,384], index: 6, kind: input, shape index: {}]   ;;  %s4838_s7 = inlined_call_operand.vmem [shape: bf16[2,128,128], index: 7, kind: input, shape index: {}]   ;;  %s4839_s8 = inlined_call_operand.vmem [shape: f32[2,1,128], index: 8, kind: input, shape index: {}, may-alias: {4,8,11,15}]   ;;  %s4840_s9 = inlined_call_operand.vmem [shape: f32[2,1,128], index: 9, kind: input, shape index: {}, may-alias: {9,16}]   ;;  %s4841_s10 = inlined_call_operand.vmem [shape: f32[2,1,128], index: 10, kind: input, shape index: {}, may-alias: {3,10}]   ;;  %s4842_s11 = inlined_call_operand.vmem [shape: f32[2,1,128], index: 11, kind: input, shape index: {}, may-alias: {4,8,11,15}]   ;;  %s4843_s12 = inlined_call_operand.vmem [shape: bf16[2,128,512], index: 12, kind: input, shape index: {}]   ;;  %s4844_s13 = inlined_call_operand.vmem [shape: f32[2,1,512], index: 13, kind: input, shape index: {}]   ;;  %s4845_s14 = inlined_call_operand.vmem [shape: bf16[2,512,128], index: 14, kind: input, shape index: {}]   ;;  %s4846_s15 = inlined_call_operand.vmem [shape: f32[2,1,128], index: 15, kind: input, shape index: {}, may-alias: {4,8,11,15}]   ;;  %s4847_s16 = inlined_call_operand.vmem [shape: f32[2,1,128], index: 16, kind: input, shape index: {}, may-alias: {9,16}]   ;;  %s4848_s17 = inlined_call_operand.vmem [shape: f32[1,128], index: 17, kind: input, shape index: {}]   ;;  %s4849_s18 = inlined_call_operand.vmem [shape: f32[1,128], index: 18, kind: input, shape index: {}]   ;;  %s4850_s19 = inlined_call_operand.hbm [shape: f32[4,1,128], index: 19, kind: output, shape index: {}]  }
   0x1   :  { %4866 = sst [smem:[#allocation19_spill]] %s4831_s0 }
   0x2   :  { %4867 = sst [smem:[#allocation20_spill]] %s4832_s1 }
   0x3   :  { %4868 = sst [smem:[#allocation21_spill]] %s4833_s2 }
   0x4   :  { %4869 = sst [smem:[#allocation22_spill]] %s4834_s3 }
   0x5   :  { %4870 = sst [smem:[#allocation23_spill]] %s4836_s5 }
   0x6   :  { %4871 = sst [smem:[#allocation24_spill]] %s4837_s6 }
   0x7   :  { %4872 = sst [smem:[#allocation25_spill]] %s4838_s7 }
   0x8   :  { %4873 = sst [smem:[#allocation26_spill]] %s4842_s11 }
   0x9   :  { %4874 = sst [smem:[#allocation27_spill]] %s4843_s12 }
   0xa   :  { %4875 = sst [smem:[#allocation28_spill]] %s4846_s15 }
   0xb   :  { %4876 = sst [smem:[#allocation29_spill]] %s4847_s16 }
   0xc   :  { %4877 = sst [smem:[#allocation30_spill]] %s4848_s17 }
   0xd   :  { %4878 = sst [smem:[#allocation31_spill]] %s4849_s18 }
   0xe   :  { %4879 = sst [smem:[#allocation32_spill]] %s4850_s19 }
   0xf   :  { %24 = vsyncpa [#allocation4], 0 }
  0x10   :  { %26 = vsyncpa [#allocation4 + $0x1], 0  ;;  %s4150_s0 = smov 0   ;;  %s4152_s30 = smov 0  }
  0x11   :  { %s4154_s20 = smov 0   ;;  %s4156_s21 = smov 0  }
  0x12   :  { %s4158_s1 = smov 0   ;;  %s4160_s22 = smov 0  }
  0x13   :  { %s4162_s2 = smov 0   ;;  %s4164_s23 = smov 0  }
  0x14 LB: > { %4880 = sst [smem:[#allocation6_spill]] %s4009_s0  ;;  %s3286_s24 = sadd.s32 4294967295, %s4037_s23   ;;  %s4037_s23 = sphi %s4164_s23, %s32_s23   ;;  %s4033_s2 = sphi %s4162_s2, %s4935_s2   ;;  %s4029_s22 = sphi %s4160_s22, %s4934_s22   ;;  %s4025_s1 = sphi %s4158_s1, %s4933_s1   ;;  %s4021_s21 = sphi %s4156_s21, %s4932_s21   ;;  %s4017_s20 = sphi %s4154_s20, %s4931_s20   ;;  %s4013_s30 = sphi %s4152_s30, %s4930_s30   ;;  %s4009_s0 = sphi %s4150_s0, %s4929_s0  }
  0x15   : > { %4881 = sst [smem:[#allocation7_spill]] %s4013_s30  ;;  %s3287_s25 = sadd.s32 4294967294, %s4037_s23  }
  0x16   : > { %4882 = sst [smem:[#allocation8_spill]] %s4017_s20  ;;  %s41_s3 = sadd.s32 1, %s4029_s22 }
  0x17   : > { %4883 = sst [smem:[#allocation9_spill]] %s4021_s21  ;;  %p42_p0 = scmp.ge.s32.totalorder %s41_s3, 2 }
  0x18   : > { %4884 = sst [smem:[#allocation10_spill]] %s4025_s1  ;;  %s44_s26 = sadd.s32 1, %s4033_s2 }
  0x19   : > { %4885 = sst [smem:[#allocation11_spill]] %s4029_s22  ;;  %p535_p1 = scmp.ne.s32.totalorder %s4017_s20, %s4013_s30 }
  0x1a   : > { %4886 = sst [smem:[#allocation12_spill]] %s4033_s2  ;;  %p536_p2 = scmp.eq.s32.totalorder %s3286_s24, 3 }
  0x1b   : > { %4887 = sst [smem:[#allocation13_spill]] %s4037_s23  ;;  %s4937_s3 = smov (%p42_p0, %s41_s3), 0 }
  0x1c   : > { %4888 = sst [smem:[#allocation14_spill]] %s4937_s3  ;;  %s4939_s26 = smov (!%p42_p0, %s44_s26), %s4033_s2 }
  0x1d   : > { %p4199_p3 = por %p536_p2, %p535_p1  ;;  %p541_p4 = scmp.ne.s32.totalorder %s4013_s30, %s4009_s0 }
  0x1e   : > { %p46_p5 = scmp.ge.s32.totalorder %s4939_s26, 2  ;;  %p542_p6 = scmp.eq.s32.totalorder %s3287_s25, 3 }
  0x1f   : > { %s4889_s27 = scalar_select %p4199_p3, 1, 0 }
  0x20   : > { %p3290_p7 = scmp.ge.s32.totalorder %s4037_s23, 1  ;;  %p675_p8 = scmp.lt.s32.totalorder %s4037_s23, 5 }
  0x21   : > { %4890 = sst [smem:[#allocation15_spill]] %s4889_s27  ;;  %s4941_s26 = smov (%p46_p5, %s4939_s26), 0 }
  0x22   : > { %4891 = sst [smem:[#allocation16_spill]] %s4941_s26  ;;  %p4209_p9 = por %p542_p6, %p541_p4 }
  0x23   : > { %p676_p10 = pnand %p3290_p7, %p675_p8  ;;  %s522_s29 = ssub.s32 %s4033_s2, %s4941_s26 }
  0x24   : > { %s4892_s28 = scalar_select %p4209_p9, 1, 0 }
  0x25   : > { %s525_s24 = sadd.s32 1, %s4017_s20  ;;  %p523_p11 = scmp.eq.s32.totalorder %s522_s29, 0 }
  0x26   : > { %4893 = sst [smem:[#allocation17_spill]] %s4892_s28  ;;  %679 = sbr.rel (%p676_p10) target bundleno = 4468 (0x1174), region = 96 }
  0x27   : > { %s4217_s3 = scalar_select %p523_p11, %s4017_s20, %s525_s24  }
  0x28   : > { %s4856_s25 = sand.u32 (!%p676_p10), 1, %s4013_s30   ;;  %s3292_s22 = sshll.u32 (!%p676_p10), %s4025_s1, 1 }
  0x29   : > { %4894 = sst [smem:[#allocation18_spill]] %s4217_s3  ;;  %s3291_s0 = sshll.u32 (!%p676_p10), %s4856_s25, 1 }
  0x2a   : > { %p784_p12 = scmp.lt.s32.totalorder (!%p676_p10), %s3292_s22, 3  ;;  %p789_p13 = scmp.lt.s32.totalorder (!%p676_p10), %s4021_s21, 1 }
  0x2b   : > { %s4895_s2 = sld [smem:[#allocation19_spill]] (!%p676_p10)  ;;  %s4897_s5 = sld [smem:[#allocation23_spill]] (!%p676_p10) }
  0x2c   : > { %s4898_s7 = sld [smem:[#allocation25_spill]] (!%p676_p10)  ;;  %s4899_s6 = sld [smem:[#allocation24_spill]] (!%p676_p10) }
  0x2d   : > { %s4943_s22 = smov (!%p784_p12, %s3292_s22), 3  ;;  %s4901_s12 = sld [smem:[#allocation27_spill]] }
  0x2e   : > { %s4225_s28 = scalar_select %p789_p13, %s4021_s21, 1 }
  0x2f   : > { %s3293_s29 = sshll.u32 %s4943_s22, 1  ;;  %s4903_s20 = sld [smem:[#allocation29_spill]] }
  0x30   : > { %s3677_s18 = smul.u32 192, %s4225_s28  ;;  %s3437_s21 = sshll.u32 %s4225_s28, 6 }
  0x31   : > { %s787_s25 = scalar_lea.vmem %s4895_s2, %s3293_s29  ;;  %s3678_s17 = smul.u32 3, %s4225_s28 }
  0x32   : > { %s4244_s15 = scalar_lea.vmem %s4897_s5, %s3677_s18  ;;  %s4249_s29 = scalar_lea.vmem %s4898_s7, %s3437_s21 }
  0x33   : > { %s4254_s30 = scalar_lea.vmem %s4899_s6, %s3678_s17  ;;  %s3438_s7 = sshll.u32 %s4225_s28, 8 }
  0x34   : > { %s4276_s23 = scalar_lea.vmem %s4901_s12, %s3438_s7  ;;  %s3299_s3 = sshll.u32 %s4225_s28, 2 }
  0x35   : > { %s4282_s19 = scalar_lea.vmem %s4844_s13, %s3299_s3  ;;  %s4287_s18 = scalar_lea.vmem %s4845_s14, %s3438_s7 }
  0x36   : > { %s4902_s21 = sld [smem:[#allocation28_spill]]  ;;  %s840_s17 = scalar_lea.vmem %s4903_s20, %s4225_s28 }
  0x37   : > { %s4297_s12 = scalar_lea.vmem [#allocation3], %s3291_s0  ;;  %s4904_s11 = sld [smem:[#allocation9_spill]] }
  0x3c   : > { %s837_s2 = scalar_lea.vmem %s4902_s21, %s4225_s28 }
  0x3d   : > { %p3302_p0 = scmp.ne.s32.totalorder %s4904_s11, 0 }
  0x3e   : > { %s4905_s27 = sld [smem:[#allocation21_spill]] (!%p3302_p0)  ;;  %s4906_s1 = sld [smem:[#allocation20_spill]] (!%p3302_p0)  ;;  %v849_v2 = vld [vmem:[%s787_s25] sm:$0x3] (!%p3302_p0)  ;;  %vm858_vm0 = vcmask (!%p3302_p0), 1042432   ;;  %vm859_vm1 = vcmask (!%p3302_p0), 1046532  }
  0x3f   : > { %846 = sbr.rel (%p3302_p0) target bundleno = 77 (0x4d), region = 100  ;;  %v851_v4 = vunpack.c.l.bf16 (!%p3302_p0), %v849_v2  ;;  %v850_v6 = vld [vmem:[%s787_s25 + $0x2] sm:$0x3] (!%p3302_p0)  ;;  %vm860_vm2 = vmor (!%p3302_p0), %vm858_vm0, %vm859_vm1  ;;  %v4039_v10 = vmov (!%p3302_p0), 0.0  }
  0x40   : > { %v852_v8 = vunpack.c.l.bf16 (!%p3302_p0), %v850_v6  ;;  %870 = vst [vmem:[#allocation2 + $0x5] sm:$0x7] (!%p3302_p0), %v4039_v10  ;;  %871 = vst [vmem:[#allocation2 + $0xd] sm:$0x7] (!%p3302_p0), %v4039_v10 }
  0x44   : > { %v847_v0 = vld [vmem:[%s4905_s27] sm:$0x1f] (!%p3302_p0) }
  0x45   : > { %v848_v1 = vld [vmem:[%s4906_s1] sm:$0x1] (!%p3302_p0)  ;;  %v857_v5 = vcombine.high (!%p3302_p0), %v847_v0, %v847_v0  ;;  %v3303_v7 = vrot.slane (!%p3302_p0), %v847_v0, 9 }
  0x46   : > { %v853_v3 = vadd.f32 %v848_v1, %v847_v0 }
  0x47   : > { %v863_v9 = vrot.slane %v857_v5, 5 }
  0x48   : > { %854 = vst [vmem:[#allocation2] sm:$0x1] %v853_v3  ;;  %855 = vst [vmem:[#allocation2 + $0x8] sm:$0x1] %v853_v3 }
  0x49   : > { %v864_v11 = vsel %vm860_vm2, %v3303_v7, %v863_v9 }
  0x4a   : > { %v866_v12 = vadd.f32 %v864_v11, %v851_v4  ;;  %v867_v13 = vadd.f32 %v864_v11, %v852_v8 }
  0x4c   : > { %868 = vst [vmem:[#allocation2 + $0x1] sm:$0xf] %v866_v12  ;;  %869 = vst [vmem:[#allocation2 + $0x9] sm:$0xf] %v867_v13 }
  0x4d PF: > { %v3761_v16 = vld [vmem:[%s4244_s15 + $0x4] ss:$12 sps:$4 sm:$0xff]   ;;  %v3763_v17 = vld [vmem:[%s4244_s15] ss:$12 sps:$4 sm:$0xff]   ;;  %v4040_v18 = vmov 0.0   ;;  %v4041_v44 = vmov 0   ;;  %s4909_s22 = scalar_lea.vmem %s4835_s4, %s4225_s28  ;;  %v874_v3 = vlaneseq  ;;  %s4910_s24 = scalar_lea.vmem %s4839_s8, %s4225_s28 }
  0x4e   : > { %3541 = vmatprep.subr.bf16.mxu1 %v4040_v18  ;;  %v3764_v19 = vld [vmem:[%s4244_s15 + $0x8] ss:$12 sps:$4 sm:$0xff]   ;;  %1097 = vmatprep.subr.bf16.mxu0 %v3761_v16  ;;  %v3767_v29 = vld [vmem:[%s4244_s15 + $0x18] ss:$12 sps:$4 sm:$0xff]   ;;  %v3768_v30 = vld [vmem:[%s4244_s15 + $0x20] ss:$12 sps:$4 sm:$0xff]   ;;  %s4911_s16 = scalar_lea.vmem %s4840_s9, %s4225_s28  ;;  %s4912_s1 = scalar_lea.vmem %s4841_s10, %s4225_s28 }
  0x4f   : > { %v3765_v20 = vld [vmem:[%s4244_s15 + $0x1c] ss:$12 sps:$4 sm:$0xff]   ;;  %1098 = vmatpush1.bf16.msra.mxu0 %v3763_v17  ;;  %3542 = vmatpush3.bf16.msra.mxu1 %v3764_v19  ;;  %v3769_v31 = vld [vmem:[%s4244_s15 + $0x34] ss:$12 sps:$4 sm:$0xff]   ;;  %v3772_v33 = vld [vmem:[%s4244_s15 + $0x38] ss:$12 sps:$4 sm:$0xff]  }
  0x50   : > { %1099 = vmatprep.subr.bf16.mxu0 %v3765_v20  ;;  %3543 = vmatprep.subr.bf16.mxu1 %v4040_v18  ;;  %v3771_v32 = vld [vmem:[%s4244_s15 + $0x30] ss:$12 sps:$4 sm:$0xff]   ;;  %v3773_v34 = vld [vmem:[%s4244_s15 + $0x4c] ss:$12 sps:$4 sm:$0xff]   ;;  %v3775_v35 = vld [vmem:[%s4244_s15 + $0x48] ss:$12 sps:$4 sm:$0xff]  }
  0x51   : > { %v3776_v36 = vld [vmem:[%s4244_s15 + $0x50] ss:$12 sps:$4 sm:$0xff]   ;;  %v3779_v38 = vld [vmem:[%s4244_s15 + $0x60] ss:$12 sps:$4 sm:$0xff]   ;;  %v3780_v39 = vld [vmem:[%s4244_s15 + $0x68] ss:$12 sps:$4 sm:$0xff]   ;;  %1129 = vmatprep.mubr.bf16.mxu0 %v4041_v44 }
  0x52   : > { %v3777_v37 = vld [vmem:[%s4244_s15 + $0x64] ss:$12 sps:$4 sm:$0xff]   ;;  %v3781_v40 = vld [vmem:[%s4244_s15 + $0x7c] ss:$12 sps:$4 sm:$0xff]   ;;  %v3784_v42 = vld [vmem:[%s4244_s15 + $0x80] ss:$12 sps:$4 sm:$0xff]  }
  0x53   : > { %v872_v14 = vld [vmem:[#allocation2] sm:$0xff]  ;;  %v873_v15 = vld [vmem:[#allocation2 + $0x8] sm:$0xff]  ;;  %1100 = vmatpush1.bf16.msra.mxu0 %v3767_v29  ;;  %3544 = vmatpush3.bf16.msra.mxu1 %v3768_v30  ;;  %vm4042_vm3 = vmmov 0   ;;  %v3787_v45 = vld [vmem:[%s4244_s15 + $0x90] ss:$12 sps:$4 sm:$0xff]   ;;  %s4907_s11 = sld [smem:[#allocation22_spill]] }
  0x54   : > { %880 = vadd.xlane.f32.xlu0 %v872_v14  ;;  %3545 = vmatprep.subr.bf16.mxu1 %v4040_v18  ;;  %v3783_v41 = vld [vmem:[%s4244_s15 + $0x78] ss:$12 sps:$4 sm:$0xff]   ;;  %v3785_v43 = vld [vmem:[%s4244_s15 + $0x94] ss:$12 sps:$4 sm:$0xff]   ;;  %v3792_v49 = vld [vmem:[%s4244_s15 + $0xb0] ss:$12 sps:$4 sm:$0xff]  }
  0x55   : > { %1101 = vmatprep.subr.bf16.mxu0 %v3769_v31  ;;  %3557 = vmatprep.mubr.msk.bf16.mxu1 %vm4042_vm3, %v4040_v18  ;;  %v3788_v46 = vld [vmem:[%s4244_s15 + $0x98] ss:$12 sps:$4 sm:$0xff]   ;;  %v3791_v48 = vld [vmem:[%s4244_s15 + $0xa8] ss:$12 sps:$4 sm:$0xff]   ;;  %v3305_v62 = vld [vmem:[%s4909_s22] ss:$0 sm:$0xff] }
  0x56   : > { %v3789_v47 = vld [vmem:[%s4244_s15 + $0xac] ss:$12 sps:$4 sm:$0xff]   ;;  %v4367_v4 = vshrl.u32 %v874_v3, 7  ;;  %v952_v6 = vld [vmem:[%s4254_s30] sm:$0x7]  ;;  %vm1199_vm4 = vcmask 261120  }
  0x57   : > { %1102 = vmatpush1.bf16.msra.mxu0 %v3771_v32  ;;  %3546 = vmatpush3.bf16.msra.mxu1 %v3772_v33  ;;  %vm1320_vm5 = vcmask 1043456   ;;  %vm1292_vm7 = vcmask 64512   ;;  %s4044_s30 = smov 96   ;;  %s4045_s26 = smov 64   ;;  %vm2102_vm8 = vcmask 523264   ;;  %vm2107_vm9 = vcmask 785408  }
  0x58   : > { %882 = vadd.xlane.f32.xlu0 %v873_v15  ;;  %3547 = vmatprep.subr.bf16.mxu1 %v4040_v18  ;;  %v960_v5 = vsub.s32 1, %v4367_v4  ;;  %v964_v7 = vsub.s32 2, %v4367_v4  ;;  %v956_v9 = vsub.s32 0, %v4367_v4  ;;  %s4046_s21 = smov 32  }
  0x59   : > { %1103 = vmatprep.subr.bf16.mxu0 %v3773_v34  ;;  %s4908_s15 = scalar_lea.vmem %s4907_s11, %s4225_s28  ;;  %s4913_s11 = sld [smem:[#allocation26_spill]] }
  0x5a   : > { %v3304_v58 = vld [vmem:[%s4908_s15] ss:$0 sm:$0xff]  ;;  %v961_v8 = vrot.slane %v952_v6, %v960_v5  ;;  %v965_v12 = vrot.slane %v952_v6, %v964_v7 }
  0x5b   : > { %1104 = vmatpush1.bf16.msra.mxu0 %v3775_v35  ;;  %3548 = vmatpush3.bf16.msra.mxu1 %v3776_v36  ;;  %v875_v35 = vand.u32 127, %v874_v3  ;;  %v4043_v36 = vmov -1e+30  }
  0x5c   : > { %3549 = vmatprep.subr.bf16.mxu1 %v4040_v18  ;;  %1105 = vmatprep.subr.bf16.mxu0 %v3777_v37 }
  0x5d   : > { %vm876_vm6 = vcmp.lt.s32.totalorder %v875_v35, 5 }
  0x5e   : > { %v4408_v37 = vsel %vm876_vm6, 0.0, %v4043_v36 }
  0x5f   : > { %1106 = vmatpush1.bf16.msra.mxu0 %v3779_v38  ;;  %3550 = vmatpush3.bf16.msra.mxu1 %v3780_v39  ;;  %s4914_s15 = scalar_lea.vmem %s4913_s11, %s4225_s28 }
  0x60   : > { %1107 = vmatprep.subr.bf16.mxu0 %v3781_v40  ;;  %3551 = vmatprep.subr.bf16.mxu1 %v4040_v18 }
  0x63   : > { %1108 = vmatpush1.bf16.msra.mxu0 %v3783_v41  ;;  %3552 = vmatpush3.bf16.msra.mxu1 %v3784_v42 }
  0x64   : > { %1109 = vmatprep.subr.bf16.mxu0 %v3785_v43  ;;  %3553 = vmatprep.subr.bf16.mxu1 %v4040_v18 }
  0x67   : > { %1110 = vmatpush1.bf16.msra.mxu0 %v3787_v45  ;;  %3554 = vmatpush3.bf16.msra.mxu1 %v3788_v46 }
  0x68   : > { %1111 = vmatprep.subr.bf16.mxu0 %v3789_v47  ;;  %3555 = vmatprep.subr.bf16.mxu1 %v4040_v18 }
  0x6b   : > { %1112 = vmatpush1.bf16.msra.mxu0 %v3791_v48  ;;  %3556 = vmatpush3.bf16.msra.mxu1 %v3792_v49 }
  0x6c   : > { %3561 = vmatprep.subr.bf16.mxu1 %v4040_v18  ;;  %3585 = vmatprep.subr.bf16.mxu0 %v4040_v18 }
  0xe1   : > { %v881_v21 = vpop.xlane.xlu0 %880 }
  0xe2   : > { %v885_v22 = vmul.f32 0.0078125, %v881_v21 }
  0xe4   : > { %v4312_v23 = vsub.f32 %v872_v14, %v885_v22  ;;  %v957_v22 = vrot.slane %v952_v6, %v956_v9 }
  0xe5   : > { %v883_v24 = vpop.xlane.xlu0 %882 }
  0xe6   : > { %v886_v25 = vmul.f32 0.0078125, %v883_v24  ;;  %v889_v26 = vmul.f32 %v4312_v23, %v4312_v23 }
  0xe8   : > { %v4316_v27 = vsub.f32 %v873_v15, %v886_v25  ;;  %891 = vadd.xlane.f32.xlu1 %v889_v26 }
  0xea   : > { %v890_v28 = vmul.f32 %v4316_v27, %v4316_v27 }
  0xec   : > { %893 = vadd.xlane.f32.xlu1 %v890_v28 }
 0x175   : > { %v892_v50 = vpop.xlane.xlu1 %891 }
 0x176   : > { %v895_v51 = vmul.f32 0.0078125, %v892_v50 }
 0x178   : > { %v897_v52 = vadd.f32 1e-06, %v895_v51 }
 0x179   : > { %v894_v53 = vpop.xlane.xlu1 %893 }
 0x17a   : > { %3881 = vrsqrt.f32 %v897_v52  ;;  %v896_v54 = vmul.f32 0.0078125, %v894_v53 }
 0x17c   : > { %v898_v55 = vadd.f32 1e-06, %v896_v54 }
 0x17e   : > { %3883 = vrsqrt.f32 %v898_v55 }
 0x184   : > { %v3882_v56 = vpop.eup %3881 }
 0x185   : > { %v901_v57 = vmul.f32 %v3882_v56, %v4312_v23 }
 0x187   : > { %v909_v61 = vmul.f32 %v3304_v58, %v901_v57 }
 0x188   : > { %v3884_v59 = vpop.eup %3883 }
 0x189   : > { %v902_v60 = vmul.f32 %v3884_v59, %v4316_v27  ;;  %v917_v0 = vadd.f32 %v3305_v62, %v909_v61 }
 0x18b   : > { %v910_v63 = vmul.f32 %v3304_v58, %v902_v60 }
 0x18d   : > { %v918_v1 = vadd.f32 %v3305_v62, %v910_v63 }
 0x18f   : > { %v919_v2 = vpack.c.bf16 %v918_v1, %v917_v0 }
 0x191   : > { %1130 = vmatmul.mubr.bf16.vlgmr.msra.gmra.mrb[0].mxu0 %v919_v2  ;;  %3558 = vmatmul.mubr.bf16.vlgmr.msra.gmra.mrb[0].mxu1 %v919_v2 }
 0x192   : > { %3563 = vmatprep.mubr.msk.bf16.mxu1 %vm4042_vm3, %v4040_v18  ;;  %3587 = vmatprep.mubr.msk.bf16.mxu0 %vm4042_vm3, %v4040_v18 }
 0x264   : > { %v1131_v10 = vpop.f32.mrb[0].mxu0  ;;  %v1174_v11 = vpop.f32.mrb[0].mxu1 }
 0x265   : > { %v1133_v13 = vpop.f32.mrb[1].mxu0  ;;  %v3559_v14 = vpop.f32.mrb[1].mxu1  ;;  %v1132_v26 = vadd.f32 %v1131_v10, %v957_v22  ;;  %v1175_v29 = vadd.f32 %v1174_v11, %v965_v12 }
 0x266   : > { %v1134_v15 = vadd.f32 %v1133_v13, %v961_v8  ;;  %v1135_v16 = vpop.f32.mrb[2].mxu0  ;;  %v1177_v17 = vpop.f32.mrb[2].mxu1 }
 0x267   : > { %v4377_v19 = vadd.f32 %v1177_v17, %v965_v12  ;;  %v1137_v20 = vpop.f32.mrb[3].mxu0  ;;  %v3560_v21 = vpop.f32.mrb[3].mxu1  ;;  %v4388_v28 = vpack.c.bf16 %v1132_v26, %v1132_v26  ;;  %v1136_v31 = vadd.f32 %v1135_v16, %v957_v22  ;;  %v4397_v32 = vpack.c.bf16 %v1175_v29, %v1175_v29 }
 0x268   : > { %v4381_v23 = vpack.c.bf16 %v1134_v15, %v1134_v15  ;;  %v1138_v24 = vadd.f32 %v1137_v20, %v961_v8 }
 0x269   : > { %v4399_v33 = vpack.c.bf16 %v1136_v31, %v1136_v31  ;;  %v1322_v34 = vsel %vm1320_vm5, %v4397_v32, 0  ;;  %v4428_v3 = vpack.c.bf16 %v4377_v19, %v4377_v19 }
 0x26a   : > { %v1204_v25 = vsel %vm1199_vm4, %v4381_v23, 0  ;;  %v4386_v27 = vpack.c.bf16 %v1138_v24, %v1138_v24 }
 0x26b   : > { %3562 = vmatpush3.bf16.xpose.msra.mxu1 %v1204_v25  ;;  %v1368_v11 = vsel %vm1320_vm5, %v4428_v3, 0 }
 0x26c   : > { %3567 = vmatprep.subr.bf16.mxu1 %v4040_v18  ;;  %v1250_v30 = vsel %vm1199_vm4, %v4386_v27, 0 }
 0x272   : > { %3564 = vmatmul.mubr.msk.bf16.vlgmr.msra.gmra.mrb[4].mxu1 %vm1199_vm4, %v4388_v28 }
 0x273   : > { %3568 = vmatpush3.bf16.xpose.msra.mxu1 %v1250_v30  ;;  %3569 = vmatprep.mubr.msk.bf16.mxu1 %vm4042_vm3, %v4040_v18 }
 0x274   : > { %3573 = vmatprep.subr.bf16.mxu1 %v4040_v18 }
 0x27a   : > { %3570 = vmatmul.mubr.msk.bf16.vlgmr.msra.gmra.mrb[8].mxu1 %vm1199_vm4, %v4399_v33 }
 0x27b   : > { %3574 = vmatpush3.bf16.msra.mxu1 %v1322_v34  ;;  %3575 = vmatprep.mubr.msk.bf16.mxu1 %vm4042_vm3, %v4040_v18 }
 0x27c   : > { %3579 = vmatprep.subr.bf16.mxu1 %v4040_v18 }
 0x345   : > { %v1240_v38 = vpop.f32.mrb[4].mxu1 }
 0x346   : > { %v1241_v39 = vadd.f32 %v1240_v38, %v4408_v37  ;;  %v3565_v40 = vpop.f32.mrb[5].mxu1 }
 0x347   : > { %v1243_v41 = vpop.f32.mrb[6].mxu1 }
 0x348   : > { %v3566_v42 = vpop.f32.mrb[7].mxu1  ;;  %v1293_v43 = vsel %vm1292_vm7, %v1241_v39, -inf }
 0x349   : > { %1294 = vmax.xlane.f32.xlu0 %v1293_v43 }
 0x34d   : > { %v1286_v45 = vpop.f32.mrb[8].mxu1 }
 0x34e   : > { %v1287_v46 = vadd.f32 %v1286_v45, %v4408_v37  ;;  %v3571_v47 = vpop.f32.mrb[9].mxu1 }
 0x34f   : > { %v1289_v48 = vpop.f32.mrb[10].mxu1 }
 0x350   : > { %v3572_v49 = vpop.f32.mrb[11].mxu1  ;;  %v1296_v50 = vsel %vm1292_vm7, %v1287_v46, -inf }
 0x351   : > { %1297 = vmax.xlane.f32.xlu1 %v1296_v50 }
 0x362   : > { %1464 = vrot.lane.b32.xlu1 %v4386_v27, %s4044_s30 }
 0x3d6   : > { %v1295_v51 = vpop.xlane.xlu0 %1294 }
 0x3d7   : > { %v1299_v52 = vsub.f32 %v1241_v39, %v1295_v51 }
 0x3d9   : > { %v1301_v53 = vmul.f32 1.442695, %v1299_v52 }
 0x3db   : > { %3885 = vpow2.f32 %v1301_v53 }
 0x3de   : > { %v1298_v54 = vpop.xlane.xlu1 %1297 }
 0x3df   : > { %v1300_v55 = vsub.f32 %v1287_v46, %v1298_v54 }
 0x3e1   : > { %v1303_v56 = vmul.f32 1.442695, %v1300_v55 }
 0x3e2   : > { %v1465_v62 = vpop.permute.xlu1 %1464 }
 0x3e3   : > { %3887 = vpow2.f32 %v1303_v56  ;;  %v1470_v15 = vsel %vm1199_vm4, %v1465_v62, 0 }
 0x3e5   : > { %v3886_v57 = vpop.eup %3885 }
 0x3e6   : > { %v1305_v58 = vsel %vm1292_vm7, %v3886_v57, 0.0 }
 0x3e7   : > { %1306 = vadd.xlane.f32.xlu0 %v1305_v58 }
 0x3ed   : > { %v3888_v59 = vpop.eup %3887 }
 0x3ee   : > { %v1308_v60 = vsel %vm1292_vm7, %v3888_v59, 0.0 }
 0x3ef   : > { %1309 = vadd.xlane.f32.xlu1 %v1308_v60 }
 0x3fd   : > { %1414 = vrot.lane.b32.xlu0 %v4381_v23, %s4044_s30 }
 0x400   : > { %1412 = vrot.lane.b32.xlu1 %v4388_v28, %s4044_s30 }
 0x404   : > { %1462 = vrot.lane.b32.xlu1 %v4399_v33, %s4044_s30 }
 0x474   : > { %v1307_v61 = vpop.xlane.xlu0 %1306 }
 0x475   : > { %3889 = vrcp.f32 %v1307_v61 }
 0x478   : > { %v1415_v63 = vpop.permute.xlu0 %1414 }
 0x479   : > { %v1420_v0 = vsel %vm1199_vm4, %v1415_v63, 0 }
 0x47a   : > { %3586 = vmatpush3.bf16.xpose.msra.mxu0 %v1420_v0 }
 0x47b   : > { %3597 = vmatprep.subr.bf16.mxu0 %v4040_v18 }
 0x47c   : > { %v1310_v1 = vpop.xlane.xlu1 %1309 }
 0x47d   : > { %3891 = vrcp.f32 %v1310_v1 }
 0x47f   : > { %v3890_v2 = vpop.eup %3889 }
 0x480   : > { %v1313_v6 = vmul.f32 %v3890_v2, %v3886_v57  ;;  %v1413_v8 = vpop.permute.xlu1 %1412 }
 0x481   : > { %3588 = vmatmul.mubr.msk.bf16.vlgmr.msra.gmra.mrb[4].mxu0 %vm1199_vm4, %v1413_v8 }
 0x482   : > { %v1315_v10 = vpack.c.bf16 %v1313_v6, %v1313_v6  ;;  %3599 = vmatprep.mubr.msk.bf16.mxu0 %vm4042_vm3, %v4040_v18 }
 0x484   : > { %3576 = vmatmul.mubr.msk.bf16.vlgmr.msra.gmra.mrb[12].mxu1 %vm1292_vm7, %v1315_v10  ;;  %v1463_v16 = vpop.permute.xlu1 %1462 }
 0x485   : > { %3580 = vmatpush3.bf16.msra.mxu1 %v1368_v11  ;;  %3581 = vmatprep.mubr.msk.bf16.mxu1 %vm4042_vm3, %v4040_v18 }
 0x486   : > { %3591 = vmatprep.subr.bf16.mxu1 %v4040_v18 }
 0x487   : > { %v3892_v12 = vpop.eup %3891 }
 0x488   : > { %v1314_v13 = vmul.f32 %v3892_v12, %v3888_v59 }
 0x48a   : > { %v1316_v14 = vpack.c.bf16 %v1314_v13, %v1314_v13 }
 0x48c   : > { %3582 = vmatmul.mubr.msk.bf16.vlgmr.msra.gmra.mrb[16].mxu1 %vm1292_vm7, %v1316_v14 }
 0x48d   : > { %3593 = vmatprep.mubr.msk.bf16.mxu1 %vm4042_vm3, %v4040_v18 }
 0x48e   : > { %3592 = vmatpush3.bf16.xpose.msra.mxu1 %v1470_v15 }
 0x48f   : > { %3603 = vmatprep.subr.bf16.mxu1 %v4040_v18 }
 0x495   : > { %3594 = vmatmul.mubr.msk.bf16.vlgmr.msra.gmra.mrb[20].mxu1 %vm1199_vm4, %v1463_v16 }
 0x496   : > { %3605 = vmatprep.mubr.msk.bf16.mxu1 %vm4042_vm3, %v4040_v18 }
 0x554   : > { %v1456_v17 = vpop.f32.mrb[4].mxu0 }
 0x555   : > { %v1457_v19 = vadd.f32 %v1456_v17, %v4408_v37  ;;  %v3589_v20 = vpop.f32.mrb[5].mxu0 }
 0x556   : > { %v1459_v21 = vpop.f32.mrb[6].mxu0 }
 0x557   : > { %v4448_v22 = vpop.f32.mrb[12].mxu1  ;;  %v3590_v24 = vpop.f32.mrb[7].mxu0  ;;  %v1512_v25 = vsel %vm1292_vm7, %v1457_v19, -inf }
 0x558   : > { %1513 = vmax.xlane.f32.xlu0 %v1512_v25  ;;  %v3577_v26 = vpop.f32.mrb[13].mxu1 }
 0x559   : > { %v1361_v29 = vpop.f32.mrb[14].mxu1 }
 0x55a   : > { %v3578_v30 = vpop.f32.mrb[15].mxu1 }
 0x55f   : > { %v4451_v31 = vpop.f32.mrb[16].mxu1 }
 0x560   : > { %v3583_v34 = vpop.f32.mrb[17].mxu1 }
 0x561   : > { %v1407_v35 = vpop.f32.mrb[18].mxu1 }
 0x562   : > { %v3584_v36 = vpop.f32.mrb[19].mxu1 }
 0x568   : > { %v1506_v38 = vpop.f32.mrb[20].mxu1 }
 0x569   : > { %v1507_v39 = vadd.f32 %v1506_v38, %v4408_v37  ;;  %v3595_v40 = vpop.f32.mrb[21].mxu1 }
 0x56a   : > { %v1509_v41 = vpop.f32.mrb[22].mxu1 }
 0x56b   : > { %v3596_v42 = vpop.f32.mrb[23].mxu1  ;;  %v1515_v43 = vsel %vm1292_vm7, %v1507_v39, -inf }
 0x56c   : > { %1516 = vmax.xlane.f32.xlu1 %v1515_v43 }
 0x57d   : > { %1584 = vrot.lane.b32.xlu1 %v4428_v3, %s4044_s30 }
 0x581   : > { %1636 = vrot.lane.b32.xlu1 %v4381_v23, %s4045_s26 }
 0x585   : > { %1686 = vrot.lane.b32.xlu1 %v4386_v27, %s4045_s26 }
 0x589   : > { %1684 = vrot.lane.b32.xlu1 %v4399_v33, %s4045_s26 }
 0x5e5   : > { %v1514_v45 = vpop.xlane.xlu0 %1513 }
 0x5e6   : > { %v1518_v46 = vsub.f32 %v1457_v19, %v1514_v45 }
 0x5e8   : > { %v1520_v47 = vmul.f32 1.442695, %v1518_v46 }
 0x5ea   : > { %3893 = vpow2.f32 %v1520_v47 }
 0x5f4   : > { %v3894_v48 = vpop.eup %3893 }
 0x5f5   : > { %v1524_v49 = vsel %vm1292_vm7, %v3894_v48, 0.0 }
 0x5f6   : > { %1525 = vadd.xlane.f32.xlu0 %v1524_v49 }
 0x5f9   : > { %v1517_v50 = vpop.xlane.xlu1 %1516 }
 0x5fa   : > { %v1519_v51 = vsub.f32 %v1507_v39, %v1517_v50 }
 0x5fc   : > { %v1522_v52 = vmul.f32 1.442695, %v1519_v51 }
 0x5fd   : > { %v1585_v53 = vpop.permute.xlu1 %1584 }
 0x5fe   : > { %3895 = vpow2.f32 %v1522_v52  ;;  %v1590_v54 = vsel %vm1320_vm5, %v1585_v53, 0 }
 0x5ff   : > { %3604 = vmatpush3.bf16.msra.mxu1 %v1590_v54 }
 0x600   : > { %3615 = vmatprep.subr.bf16.mxu1 %v4040_v18 }
 0x601   : > { %v1637_v63 = vpop.permute.xlu1 %1636 }
 0x602   : > { %v1642_v8 = vsel %vm1199_vm4, %v1637_v63, 0 }
 0x605   : > { %v1687_v6 = vpop.permute.xlu1 %1686 }
 0x606   : > { %v1692_v11 = vsel %vm1199_vm4, %v1687_v6, 0 }
 0x608   : > { %v3896_v55 = vpop.eup %3895 }
 0x609   : > { %v1527_v56 = vsel %vm1292_vm7, %v3896_v55, 0.0  ;;  %v1685_v13 = vpop.permute.xlu1 %1684 }
 0x60a   : > { %1528 = vadd.xlane.f32.xlu0 %v1527_v56 }
 0x620   : > { %1536 = vrot.lane.b32.xlu0 %v4397_v32, %s4044_s30 }
 0x624   : > { %1634 = vrot.lane.b32.xlu0 %v4388_v28, %s4045_s26 }
 0x683   : > { %v1526_v57 = vpop.xlane.xlu0 %1525 }
 0x684   : > { %3897 = vrcp.f32 %v1526_v57 }
 0x68e   : > { %v3898_v58 = vpop.eup %3897 }
 0x68f   : > { %v1532_v60 = vmul.f32 %v3898_v58, %v3894_v48 }
 0x691   : > { %v1534_v0 = vpack.c.bf16 %v1532_v60, %v1532_v60 }
 0x697   : > { %v1529_v59 = vpop.xlane.xlu0 %1528 }
 0x698   : > { %3899 = vrcp.f32 %v1529_v59 }
 0x69b   : > { %v1537_v61 = vpop.permute.xlu0 %1536 }
 0x69c   : > { %v1542_v62 = vsel %vm1320_vm5, %v1537_v61, 0 }
 0x69d   : > { %3598 = vmatpush3.bf16.msra.mxu0 %v1542_v62 }
 0x69e   : > { %3609 = vmatprep.subr.bf16.mxu0 %v4040_v18 }
 0x69f   : > { %v1635_v12 = vpop.permute.xlu0 %1634 }
 0x6a0   : > { %3600 = vmatmul.mubr.msk.bf16.vlgmr.msra.gmra.mrb[8].mxu0 %vm1292_vm7, %v1534_v0 }
 0x6a1   : > { %3611 = vmatprep.mubr.msk.bf16.mxu0 %vm4042_vm3, %v4040_v18 }
 0x6a2   : > { %v3900_v1 = vpop.eup %3899 }
 0x6a3   : > { %v1533_v2 = vmul.f32 %v3900_v1, %v3896_v55 }
 0x6a5   : > { %v1535_v10 = vpack.c.bf16 %v1533_v2, %v1533_v2 }
 0x6a6   : > { %3610 = vmatpush3.bf16.xpose.msra.mxu0 %v1642_v8 }
 0x6a7   : > { %3606 = vmatmul.mubr.msk.bf16.vlgmr.msra.gmra.mrb[24].mxu1 %vm1292_vm7, %v1535_v10  ;;  %3621 = vmatprep.subr.bf16.mxu0 %v4040_v18 }
 0x6a8   : > { %3616 = vmatpush3.bf16.xpose.msra.mxu1 %v1692_v11  ;;  %3617 = vmatprep.mubr.msk.bf16.mxu1 %vm4042_vm3, %v4040_v18 }
 0x6a9   : > { %3627 = vmatprep.subr.bf16.mxu1 %v4040_v18 }
 0x6ad   : > { %3612 = vmatmul.mubr.msk.bf16.vlgmr.msra.gmra.mrb[12].mxu0 %vm1199_vm4, %v1635_v12 }
 0x6ae   : > { %3623 = vmatprep.mubr.msk.bf16.mxu0 %vm4042_vm3, %v4040_v18 }
 0x6af   : > { %3618 = vmatmul.mubr.msk.bf16.vlgmr.msra.gmra.mrb[28].mxu1 %vm1199_vm4, %v1685_v13 }
 0x6b0   : > { %3629 = vmatprep.mubr.msk.bf16.mxu1 %vm4042_vm3, %v4040_v18 }
 0x773   : > { %v4489_v14 = vpop.f32.mrb[8].mxu0 }
 0x774   : > { %v3601_v15 = vpop.f32.mrb[9].mxu0 }
 0x775   : > { %v1581_v16 = vpop.f32.mrb[10].mxu0 }
 0x776   : > { %v3602_v17 = vpop.f32.mrb[11].mxu0 }
 0x77a   : > { %v4491_v19 = vpop.f32.mrb[24].mxu1 }
 0x77b   : > { %v3607_v20 = vpop.f32.mrb[25].mxu1 }
 0x77c   : > { %v1629_v21 = vpop.f32.mrb[26].mxu1 }
 0x77d   : > { %v3608_v24 = vpop.f32.mrb[27].mxu1 }
 0x780   : > { %v1678_v25 = vpop.f32.mrb[12].mxu0 }
 0x781   : > { %v1679_v26 = vadd.f32 %v1678_v25, %v4408_v37  ;;  %v3613_v29 = vpop.f32.mrb[13].mxu0 }
 0x782   : > { %v1681_v30 = vpop.f32.mrb[14].mxu0  ;;  %v1728_v34 = vpop.f32.mrb[28].mxu1 }
 0x783   : > { %v1729_v35 = vadd.f32 %v1728_v34, %v4408_v37  ;;  %v3614_v36 = vpop.f32.mrb[15].mxu0  ;;  %v3619_v38 = vpop.f32.mrb[29].mxu1  ;;  %v1734_v39 = vsel %vm1292_vm7, %v1679_v26, -inf }
 0x784   : > { %1735 = vmax.xlane.f32.xlu0 %v1734_v39  ;;  %v1731_v40 = vpop.f32.mrb[30].mxu1 }
 0x785   : > { %v3620_v41 = vpop.f32.mrb[31].mxu1  ;;  %v1737_v42 = vsel %vm1292_vm7, %v1729_v35, -inf  ;;  %v1632_v40 = vpack.c.bf16 %v4489_v14, %v4489_v14 }
 0x786   : > { %1738 = vmax.xlane.f32.xlu1 %v1737_v42 }
 0x797   : > { %1806 = vrot.lane.b32.xlu1 %v4428_v3, %s4045_s26 }
 0x79b   : > { %1858 = vrot.lane.b32.xlu1 %v4381_v23, %s4046_s21 }
 0x79f   : > { %1908 = vrot.lane.b32.xlu1 %v4386_v27, %s4046_s21 }
 0x7a3   : > { %1906 = vrot.lane.b32.xlu1 %v4399_v33, %s4046_s21 }
 0x811   : > { %v1736_v43 = vpop.xlane.xlu0 %1735 }
 0x812   : > { %v1740_v45 = vsub.f32 %v1679_v26, %v1736_v43 }
 0x813   : > { %v1739_v46 = vpop.xlane.xlu1 %1738 }
 0x814   : > { %v1742_v47 = vmul.f32 1.442695, %v1740_v45  ;;  %v1741_v48 = vsub.f32 %v1729_v35, %v1739_v46 }
 0x816   : > { %3901 = vpow2.f32 %v1742_v47  ;;  %v1744_v49 = vmul.f32 1.442695, %v1741_v48 }
 0x817   : > { %v1807_v50 = vpop.permute.xlu1 %1806 }
 0x818   : > { %3903 = vpow2.f32 %v1744_v49  ;;  %v1812_v51 = vsel %vm1320_vm5, %v1807_v50, 0 }
 0x819   : > { %3628 = vmatpush3.bf16.msra.mxu1 %v1812_v51 }
 0x81a   : > { %3639 = vmatprep.subr.bf16.mxu1 %v4040_v18 }
 0x81b   : > { %v1859_v58 = vpop.permute.xlu1 %1858 }
 0x81f   : > { %v1909_v63 = vpop.permute.xlu1 %1908 }
 0x820   : > { %v3902_v23 = vpop.eup %3901  ;;  %v1914_v1 = vsel %vm1199_vm4, %v1909_v63, 0  ;;  %v3797_v63 = vld [vmem:[%s4249_s29 + $0x20] sm:$0xff]  }
 0x821   : > { %v1746_v27 = vsel %vm1292_vm7, %v3902_v23, 0.0 }
 0x822   : > { %v3904_v52 = vpop.eup %3903  ;;  %1747 = vadd.xlane.f32.xlu0 %v1746_v27 }
 0x823   : > { %v1749_v33 = vsel %vm1292_vm7, %v3904_v52, 0.0  ;;  %v1907_v6 = vpop.permute.xlu1 %1906 }
 0x826   : > { %1750 = vadd.xlane.f32.xlu0 %v1749_v33 }
 0x83c   : > { %1758 = vrot.lane.b32.xlu0 %v4397_v32, %s4045_s26 }
 0x840   : > { %1856 = vrot.lane.b32.xlu0 %v4388_v28, %s4046_s21  ;;  %v1864_v28 = vsel %vm1199_vm4, %v1859_v58, 0 }
 0x8af   : > { %v1748_v53 = vpop.xlane.xlu0 %1747 }
 0x8b0   : > { %3905 = vrcp.f32 %v1748_v53 }
 0x8b3   : > { %v1751_v54 = vpop.xlane.xlu0 %1750 }
 0x8b4   : > { %3907 = vrcp.f32 %v1751_v54 }
 0x8b7   : > { %v1759_v55 = vpop.permute.xlu0 %1758 }
 0x8b8   : > { %v1764_v56 = vsel %vm1320_vm5, %v1759_v55, 0 }
 0x8b9   : > { %3622 = vmatpush3.bf16.msra.mxu0 %v1764_v56 }
 0x8ba   : > { %v3906_v57 = vpop.eup %3905  ;;  %3633 = vmatprep.subr.bf16.mxu0 %v4040_v18 }
 0x8bb   : > { %v1754_v59 = vmul.f32 %v3906_v57, %v3902_v23  ;;  %v1857_v2 = vpop.permute.xlu0 %1856 }
 0x8bd   : > { %v1756_v60 = vpack.c.bf16 %v1754_v59, %v1754_v59  ;;  %v3793_v59 = vld [vmem:[%s4249_s29] sm:$0xff]  }
 0x8be   : > { %v3908_v61 = vpop.eup %3907 }
 0x8bf   : > { %v1755_v62 = vmul.f32 %v3908_v61, %v3904_v52  ;;  %3624 = vmatmul.mubr.msk.bf16.vlgmr.msra.gmra.mrb[16].mxu0 %vm1292_vm7, %v1756_v60  ;;  %v3794_v60 = vld [vmem:[%s4249_s29 + $0x8] sm:$0xff]   ;;  %v3795_v61 = vld [vmem:[%s4249_s29 + $0x10] sm:$0xff]  }
 0x8c0   : > { %3635 = vmatprep.mubr.msk.bf16.mxu0 %vm4042_vm3, %v4040_v18 }
 0x8c1   : > { %v1757_v0 = vpack.c.bf16 %v1755_v62, %v1755_v62  ;;  %v3796_v62 = vld [vmem:[%s4249_s29 + $0x18] sm:$0xff]  }
 0x8c2   : > { %3634 = vmatpush3.bf16.xpose.msra.mxu0 %v1864_v28  ;;  %v3798_v28 = vld [vmem:[%s4249_s29 + $0x28] sm:$0xff]  }
 0x8c3   : > { %3630 = vmatmul.mubr.msk.bf16.vlgmr.msra.gmra.mrb[32].mxu1 %vm1292_vm7, %v1757_v0  ;;  %3645 = vmatprep.subr.bf16.mxu0 %v4040_v18  ;;  %v3799_v0 = vld [vmem:[%s4249_s29 + $0x30] sm:$0xff]  }
 0x8c4   : > { %3640 = vmatpush3.bf16.xpose.msra.mxu1 %v1914_v1  ;;  %3641 = vmatprep.mubr.msk.bf16.mxu1 %vm4042_vm3, %v4040_v18  ;;  %v3800_v1 = vld [vmem:[%s4249_s29 + $0x38] sm:$0xff]  }
 0x8c5   : > { %3651 = vmatprep.subr.bf16.mxu1 %v4040_v18 }
 0x8c9   : > { %3636 = vmatmul.mubr.msk.bf16.vlgmr.msra.gmra.mrb[20].mxu0 %vm1199_vm4, %v1857_v2 }
 0x8ca   : > { %3647 = vmatprep.mubr.msk.bf16.mxu0 %vm4042_vm3, %v4040_v18 }
 0x8cb   : > { %3642 = vmatmul.mubr.msk.bf16.vlgmr.msra.gmra.mrb[36].mxu1 %vm1199_vm4, %v1907_v6 }
 0x8cc   : > { %3653 = vmatprep.mubr.msk.bf16.mxu1 %vm4042_vm3, %v4040_v18 }
 0x992   : > { %v1800_v8 = vpop.f32.mrb[16].mxu0 }
 0x993   : > { %v3625_v10 = vpop.f32.mrb[17].mxu0  ;;  %v1854_v23 = vpack.c.bf16 %v1800_v8, %v1800_v8 }
 0x994   : > { %v1803_v11 = vpop.f32.mrb[18].mxu0 }
 0x995   : > { %v3626_v12 = vpop.f32.mrb[19].mxu0 }
 0x996   : > { %v1848_v13 = vpop.f32.mrb[32].mxu1 }
 0x997   : > { %v3631_v15 = vpop.f32.mrb[33].mxu1  ;;  %v1855_v41 = vpack.c.bf16 %v1848_v13, %v1848_v13 }
 0x998   : > { %v1851_v16 = vpop.f32.mrb[34].mxu1 }
 0x999   : > { %v3632_v17 = vpop.f32.mrb[35].mxu1 }
 0x99c   : > { %v1900_v20 = vpop.f32.mrb[20].mxu0 }
 0x99d   : > { %v1901_v21 = vadd.f32 %v1900_v20, %v4408_v37  ;;  %v3637_v24 = vpop.f32.mrb[21].mxu0 }
 0x99e   : > { %v1903_v25 = vpop.f32.mrb[22].mxu0  ;;  %v1950_v26 = vpop.f32.mrb[36].mxu1 }
 0x99f   : > { %v1951_v29 = vadd.f32 %v1950_v26, %v4408_v37  ;;  %v3638_v30 = vpop.f32.mrb[23].mxu0  ;;  %v3643_v34 = vpop.f32.mrb[37].mxu1  ;;  %v1956_v35 = vsel %vm1292_vm7, %v1901_v21, -inf  ;;  %v1633_v37 = vpack.c.bf16 %v4491_v19, %v4491_v19  ;;  %v1410_v25 = vpack.c.bf16 %v4448_v22, %v4448_v22  ;;  %v3352_v22 = vld [vmem:[%s4910_s24] ss:$0 sm:$0xff] }
 0x9a0   : > { %1957 = vmax.xlane.f32.xlu0 %v1956_v35  ;;  %v1953_v36 = vpop.f32.mrb[38].mxu1  ;;  %v1411_v26 = vpack.c.bf16 %v4451_v31, %v4451_v31 }
 0x9a1   : > { %v3644_v38 = vpop.f32.mrb[39].mxu1  ;;  %v1959_v39 = vsel %vm1292_vm7, %v1951_v29, -inf }
 0x9a2   : > { %1960 = vmax.xlane.f32.xlu1 %v1959_v39 }
 0x9b3   : > { %2028 = vrot.lane.b32.xlu1 %v4428_v3, %s4046_s21 }
 0x9b7   : > { %2080 = vrot.lane.b32.xlu1 %v1632_v40, %s4046_s21 }
 0x9bb   : > { %2082 = vrot.lane.b32.xlu1 %v1633_v37, %s4046_s21 }
 0x9bf   : > { %2088 = vrot.lane.b32.xlu1 %v1855_v41, %s4045_s26  ;;  %v3362_v41 = vld [vmem:[%s4911_s16] ss:$0 sm:$0xff] }
 0xa2d   : > { %v1958_v42 = vpop.xlane.xlu0 %1957 }
 0xa2e   : > { %v1962_v43 = vsub.f32 %v1901_v21, %v1958_v42 }
 0xa2f   : > { %v1961_v45 = vpop.xlane.xlu1 %1960 }
 0xa30   : > { %v1964_v46 = vmul.f32 1.442695, %v1962_v43  ;;  %v1963_v47 = vsub.f32 %v1951_v29, %v1961_v45 }
 0xa32   : > { %3909 = vpow2.f32 %v1964_v46  ;;  %v1966_v3 = vmul.f32 1.442695, %v1963_v47 }
 0xa33   : > { %v2029_v48 = vpop.permute.xlu1 %2028 }
 0xa34   : > { %3911 = vpow2.f32 %v1966_v3  ;;  %v2034_v14 = vsel %vm1320_vm5, %v2029_v48, 0  ;;  %v3937_v48 = vld [vmem:[#allocation2] sm:$0xff] }
 0xa35   : > { %3652 = vmatpush3.bf16.msra.mxu1 %v2034_v14 }
 0xa37   : > { %v2081_v20 = vpop.permute.xlu1 %2080 }
 0xa38   : > { %v2098_v30 = vsel %vm1199_vm4, %v1410_v25, %v2081_v20  ;;  %v3834_v20 = vld [vmem:[%s4276_s23 + $0xa8] ss:$16 sps:$4 sm:$0xff]  }
 0xa39   : > { %v3840_v25 = vld [vmem:[%s4276_s23 + $0xc8] ss:$16 sps:$4 sm:$0xff]  }
 0xa3b   : > { %v2083_v21 = vpop.permute.xlu1 %2082 }
 0xa3c   : > { %v3910_v49 = vpop.eup %3909  ;;  %v2101_v34 = vsel %vm1199_vm4, %v1411_v26, %v2083_v21  ;;  %v3839_v21 = vld [vmem:[%s4276_s23 + $0xc4] ss:$16 sps:$4 sm:$0xff]  }
 0xa3d   : > { %v1968_v19 = vsel %vm1292_vm7, %v3910_v49, 0.0  ;;  %v3845_v26 = vld [vmem:[%s4276_s23 + $0xe4] ss:$16 sps:$4 sm:$0xff]  }
 0xa3e   : > { %v3912_v50 = vpop.eup %3911  ;;  %1969 = vadd.xlane.f32.xlu0 %v1968_v19 }
 0xa3f   : > { %v1971_v51 = vsel %vm1292_vm7, %v3912_v50, 0.0 }
 0xa42   : > { %1972 = vadd.xlane.f32.xlu0 %v1971_v51  ;;  %v3803_v51 = vld [vmem:[%s4276_s23 + $0x4] ss:$16 sps:$4 sm:$0xff]  }
 0xa43   : > { %2496 = vmatprep.subr.bf16.mxu1 %v3803_v51  ;;  %v3851_v51 = vld [vmem:[%s4287_s18] sm:$0xff]  }
 0xa58   : > { %1980 = vrot.lane.b32.xlu0 %v4397_v32, %s4046_s21 }
 0xa5c   : > { %2086 = vrot.lane.b32.xlu0 %v1854_v23, %s4045_s26  ;;  %v3804_v23 = vld [vmem:[%s4276_s23 + $0x8] ss:$16 sps:$4 sm:$0xff]  }
 0xacb   : > { %v1970_v27 = vpop.xlane.xlu0 %1969 }
 0xacc   : > { %3913 = vrcp.f32 %v1970_v27  ;;  %v3806_v27 = vld [vmem:[%s4276_s23 + $0xc] ss:$16 sps:$4 sm:$0xff]  }
 0xacf   : > { %v1973_v52 = vpop.xlane.xlu0 %1972 }
 0xad0   : > { %3915 = vrcp.f32 %v1973_v52  ;;  %v3809_v52 = vld [vmem:[%s4276_s23 + $0x24] ss:$16 sps:$4 sm:$0xff]  }
 0xad3   : > { %v1981_v33 = vpop.permute.xlu0 %1980 }
 0xad4   : > { %v1986_v53 = vsel %vm1320_vm5, %v1981_v33, 0  ;;  %v3812_v33 = vld [vmem:[%s4276_s23 + $0x2c] ss:$16 sps:$4 sm:$0xff]  }
 0xad5   : > { %3646 = vmatpush3.bf16.msra.mxu0 %v1986_v53  ;;  %v3807_v53 = vld [vmem:[%s4276_s23 + $0x20] ss:$16 sps:$4 sm:$0xff]  }
 0xad6   : > { %v3914_v54 = vpop.eup %3913  ;;  %3657 = vmatprep.subr.bf16.mxu0 %v4040_v18 }
 0xad7   : > { %v1976_v55 = vmul.f32 %v3914_v54, %v3910_v49  ;;  %v2087_v24 = vpop.permute.xlu0 %2086  ;;  %v3938_v49 = vld [vmem:[#allocation2 + $0x8] sm:$0xff] }
 0xad8   : > { %v2104_v36 = vsel %vm2102_vm8, %v2098_v30, %v2087_v24  ;;  %v3810_v54 = vld [vmem:[%s4276_s23 + $0x28] ss:$16 sps:$4 sm:$0xff]   ;;  %v3842_v24 = vld [vmem:[%s4276_s23 + $0xcc] ss:$16 sps:$4 sm:$0xff]   ;;  %v3843_v30 = vld [vmem:[%s4276_s23 + $0xe0] ss:$16 sps:$4 sm:$0xff]  }
 0xad9   : > { %v1978_v56 = vpack.c.bf16 %v1976_v55, %v1976_v55 }
 0xada   : > { %v3916_v32 = vpop.eup %3915 }
 0xadb   : > { %v1977_v57 = vmul.f32 %v3916_v32, %v3912_v50  ;;  %3648 = vmatmul.mubr.msk.bf16.vlgmr.msra.gmra.mrb[24].mxu0 %vm1292_vm7, %v1978_v56  ;;  %v3801_v50 = vld [vmem:[%s4276_s23] ss:$16 sps:$4 sm:$0xff]  }
 0xadc   : > { %3673 = vmatprep.mubr.msk.bf16.mxu0 %vm4042_vm3, %v4040_v18  ;;  %3658 = vmatpush3.bf16.msra.mxu0 %v3793_v59 }
 0xadd   : > { %v1979_v58 = vpack.c.bf16 %v1977_v57, %v1977_v57  ;;  %3659 = vmatprep.subr.bf16.mxu0 %v4040_v18 }
 0xadf   : > { %3654 = vmatmul.mubr.msk.bf16.vlgmr.msra.gmra.mrb[40].mxu1 %vm1292_vm7, %v1979_v58 }
 0xae0   : > { %2528 = vmatprep.mubr.bf16.mxu1 %v4041_v44  ;;  %3660 = vmatpush3.bf16.msra.mxu0 %v3794_v60 }
 0xae1   : > { %3661 = vmatprep.subr.bf16.mxu0 %v4040_v18  ;;  %2497 = vmatpush1.bf16.msra.mxu1 %v3801_v50  ;;  %v3850_v50 = vld [vmem:[%s4287_s18 + $0xc0] sm:$0xff]  }
 0xae2   : > { %2498 = vmatprep.subr.bf16.mxu1 %v3809_v52  ;;  %v3854_v52 = vld [vmem:[%s4287_s18 + $0xc8] sm:$0xff]  }
 0xae4   : > { %3662 = vmatpush3.bf16.msra.mxu0 %v3795_v61 }
 0xae5   : > { %3663 = vmatprep.subr.bf16.mxu0 %v4040_v18  ;;  %2499 = vmatpush1.bf16.msra.mxu1 %v3807_v53  ;;  %v3856_v53 = vld [vmem:[%s4287_s18 + $0x88] sm:$0xff]  }
 0xae8   : > { %3664 = vmatpush3.bf16.msra.mxu0 %v3796_v62  ;;  %v3815_v62 = vld [vmem:[%s4276_s23 + $0x44] ss:$16 sps:$4 sm:$0xff]  }
 0xae9   : > { %3665 = vmatprep.subr.bf16.mxu0 %v4040_v18  ;;  %2500 = vmatprep.subr.bf16.mxu1 %v3815_v62  ;;  %v3866_v62 = vld [vmem:[%s4287_s18 + $0xe0] sm:$0xff]  }
 0xaec   : > { %3666 = vmatpush3.bf16.msra.mxu0 %v3797_v63  ;;  %v3818_v63 = vld [vmem:[%s4276_s23 + $0x4c] ss:$16 sps:$4 sm:$0xff]  }
 0xaed   : > { %3667 = vmatprep.subr.bf16.mxu0 %v4040_v18 }
 0xaf0   : > { %3668 = vmatpush3.bf16.msra.mxu0 %v3798_v28  ;;  %v3813_v28 = vld [vmem:[%s4276_s23 + $0x40] ss:$16 sps:$4 sm:$0xff]  }
 0xaf1   : > { %3669 = vmatprep.subr.bf16.mxu0 %v4040_v18  ;;  %2501 = vmatpush1.bf16.msra.mxu1 %v3813_v28  ;;  %v3868_v28 = vld [vmem:[%s4287_s18 + $0xa0] sm:$0xff]  }
 0xaf4   : > { %3670 = vmatpush3.bf16.msra.mxu0 %v3799_v0  ;;  %v3816_v0 = vld [vmem:[%s4276_s23 + $0x48] ss:$16 sps:$4 sm:$0xff]  }
 0xaf5   : > { %3671 = vmatprep.subr.bf16.mxu0 %v4040_v18  ;;  %v2089_v18 = vpop.permute.xlu1 %2088 }
 0xaf6   : > { %v2106_v35 = vsel %vm2102_vm8, %v2101_v34, %v2089_v18  ;;  %v3837_v18 = vld [vmem:[%s4276_s23 + $0xc0] ss:$16 sps:$4 sm:$0xff]   ;;  %v3846_v34 = vld [vmem:[%s4276_s23 + $0xe8] ss:$16 sps:$4 sm:$0xff]  }
 0xaf8   : > { %3672 = vmatpush3.bf16.msra.mxu0 %v3800_v1  ;;  %v3821_v1 = vld [vmem:[%s4276_s23 + $0x64] ss:$16 sps:$4 sm:$0xff]  }
 0xaf9   : > { %2539 = vmatprep.subr.bf16.mxu0 %v3806_v27  ;;  %2502 = vmatprep.subr.bf16.mxu1 %v3821_v1  ;;  %v3853_v27 = vld [vmem:[%s4287_s18 + $0x48] sm:$0xff]  }
 0xafa   : > { %v3870_v1 = vld [vmem:[%s4287_s18 + $0xe8] sm:$0xff]  }
 0xbae   : > { %v2022_v2 = vpop.f32.mrb[24].mxu0 }
 0xbaf   : > { %v2076_v6 = vpack.c.bf16 %v2022_v2, %v2022_v2  ;;  %v3649_v8 = vpop.f32.mrb[25].mxu0  ;;  %v3824_v2 = vld [vmem:[%s4276_s23 + $0x6c] ss:$16 sps:$4 sm:$0xff]  }
 0xbb0   : > { %v2025_v10 = vpop.f32.mrb[26].mxu0  ;;  %v3822_v8 = vld [vmem:[%s4276_s23 + $0x68] ss:$16 sps:$4 sm:$0xff]  }
 0xbb1   : > { %2092 = vrot.lane.b32.xlu0 %v2076_v6, %s4044_s30  ;;  %v3650_v11 = vpop.f32.mrb[27].mxu0  ;;  %v3819_v6 = vld [vmem:[%s4276_s23 + $0x60] ss:$16 sps:$4 sm:$0xff]   ;;  %v3827_v10 = vld [vmem:[%s4276_s23 + $0x84] ss:$16 sps:$4 sm:$0xff]  }
 0xbb2   : > { %v2070_v12 = vpop.f32.mrb[40].mxu1  ;;  %2503 = vmatpush1.bf16.msra.mxu1 %v3819_v6  ;;  %v3830_v11 = vld [vmem:[%s4276_s23 + $0x8c] ss:$16 sps:$4 sm:$0xff]  }
 0xbb3   : > { %v2077_v13 = vpack.c.bf16 %v2070_v12, %v2070_v12  ;;  %v3655_v15 = vpop.f32.mrb[41].mxu1  ;;  %v3825_v12 = vld [vmem:[%s4276_s23 + $0x80] ss:$16 sps:$4 sm:$0xff]   ;;  %2504 = vmatprep.subr.bf16.mxu1 %v3827_v10  ;;  %v3872_v6 = vld [vmem:[%s4287_s18 + $0xa8] sm:$0xff]  }
 0xbb4   : > { %v2073_v16 = vpop.f32.mrb[42].mxu1  ;;  %v3833_v15 = vld [vmem:[%s4276_s23 + $0xa4] ss:$16 sps:$4 sm:$0xff]  }
 0xbb5   : > { %2094 = vrot.lane.b32.xlu1 %v2077_v13, %s4044_s30  ;;  %v3656_v17 = vpop.f32.mrb[43].mxu1  ;;  %v3828_v13 = vld [vmem:[%s4276_s23 + $0x88] ss:$16 sps:$4 sm:$0xff]   ;;  %v3836_v16 = vld [vmem:[%s4276_s23 + $0xac] ss:$16 sps:$4 sm:$0xff]   ;;  %v3874_v10 = vld [vmem:[%s4287_s18 + $0xf0] sm:$0xff]  }
 0xbb6   : > { %2505 = vmatpush1.bf16.msra.mxu1 %v3825_v12  ;;  %v3831_v17 = vld [vmem:[%s4276_s23 + $0xa0] ss:$16 sps:$4 sm:$0xff]  }
 0xbb7   : > { %2506 = vmatprep.subr.bf16.mxu1 %v3833_v15  ;;  %v3876_v12 = vld [vmem:[%s4287_s18 + $0xb0] sm:$0xff]   ;;  %v3878_v15 = vld [vmem:[%s4287_s18 + $0xf8] sm:$0xff]  }
 0xbba   : > { %2507 = vmatpush1.bf16.msra.mxu1 %v3831_v17  ;;  %v3880_v17 = vld [vmem:[%s4287_s18 + $0xb8] sm:$0xff]  }
 0xbbb   : > { %2508 = vmatprep.subr.bf16.mxu1 %v3839_v21  ;;  %v2330_v21 = vsub.s32 3, %v4367_v4 }
 0xbbe   : > { %2509 = vmatpush1.bf16.msra.mxu1 %v3837_v18 }
 0xbbf   : > { %2510 = vmatprep.subr.bf16.mxu1 %v3845_v26 }
 0xbc2   : > { %2511 = vmatpush1.bf16.msra.mxu1 %v3843_v30 }
 0xc23   : > { %v2093_v29 = vpop.permute.xlu0 %2092 }
 0xc24   : > { %v2109_v39 = vsel %vm2107_vm9, %v2104_v36, %v2093_v29  ;;  %v3848_v29 = vld [vmem:[%s4276_s23 + $0xec] ss:$16 sps:$4 sm:$0xff]  }
 0xc27   : > { %v2095_v38 = vpop.permute.xlu1 %2094 }
 0xc28   : > { %v2111_v40 = vsel %vm2107_vm9, %v2106_v35, %v2095_v38 }
 0xc29   : > { %v3353_v37 = vcombine.low %v2109_v39, %v2111_v40 }
 0xc2b   : > { %3674 = vmatmul.mubr.bf16.vlgmr.msra.gmra.mrb[28].mxu0 %v3353_v37 }
 0xc2c   : > { %2571 = vmatprep.mubr.bf16.mxu0 %v4041_v44  ;;  %2540 = vmatpush1.bf16.msra.mxu0 %v3804_v23  ;;  %v3852_v23 = vld [vmem:[%s4287_s18 + $0x80] sm:$0xff]  }
 0xc2d   : > { %2541 = vmatprep.subr.bf16.mxu0 %v3812_v33  ;;  %v3855_v33 = vld [vmem:[%s4287_s18 + $0x8] sm:$0xff]  }
 0xc30   : > { %2542 = vmatpush1.bf16.msra.mxu0 %v3810_v54  ;;  %v3857_v54 = vld [vmem:[%s4287_s18 + $0x50] sm:$0xff]  }
 0xc31   : > { %2543 = vmatprep.subr.bf16.mxu0 %v3818_v63  ;;  %v3867_v63 = vld [vmem:[%s4287_s18 + $0x20] sm:$0xff]  }
 0xc34   : > { %2544 = vmatpush1.bf16.msra.mxu0 %v3816_v0  ;;  %v3869_v0 = vld [vmem:[%s4287_s18 + $0x68] sm:$0xff]  }
 0xc35   : > { %2545 = vmatprep.subr.bf16.mxu0 %v3824_v2  ;;  %v3871_v2 = vld [vmem:[%s4287_s18 + $0x28] sm:$0xff]  }
 0xc38   : > { %2546 = vmatpush1.bf16.msra.mxu0 %v3822_v8  ;;  %v3873_v8 = vld [vmem:[%s4287_s18 + $0x70] sm:$0xff]  }
 0xc39   : > { %2547 = vmatprep.subr.bf16.mxu0 %v3830_v11  ;;  %v3875_v11 = vld [vmem:[%s4287_s18 + $0x30] sm:$0xff]  }
 0xc3c   : > { %2548 = vmatpush1.bf16.msra.mxu0 %v3828_v13  ;;  %v3877_v13 = vld [vmem:[%s4287_s18 + $0x78] sm:$0xff]  }
 0xc3d   : > { %2549 = vmatprep.subr.bf16.mxu0 %v3836_v16  ;;  %v3879_v16 = vld [vmem:[%s4287_s18 + $0x38] sm:$0xff]  }
 0xc40   : > { %2550 = vmatpush1.bf16.msra.mxu0 %v3834_v20  ;;  %v2314_v20 = vld [vmem:[%s4282_s19] sm:$0xf] }
 0xc41   : > { %2551 = vmatprep.subr.bf16.mxu0 %v3842_v24  ;;  %v2319_v24 = vrot.slane %v2314_v20, %v956_v9  ;;  %v2327_v18 = vrot.slane %v2314_v20, %v964_v7  ;;  %v2331_v26 = vrot.slane %v2314_v20, %v2330_v21 }
 0xc44   : > { %2552 = vmatpush1.bf16.msra.mxu0 %v3840_v25  ;;  %v2323_v25 = vrot.slane %v2314_v20, %v960_v5 }
 0xc45   : > { %2553 = vmatprep.subr.bf16.mxu0 %v3848_v29 }
 0xc48   : > { %2554 = vmatpush1.bf16.msra.mxu0 %v3846_v34 }
 0xc49   : > { %3519 = vmatprep.subr.bf16.mxu0 %v3850_v50 }
 0xcfe   : > { %v2223_v31 = vpop.f32.mrb[28].mxu0 }
 0xcff   : > { %v2224_v42 = vadd.f32 %v3352_v22, %v2223_v31  ;;  %v3675_v43 = vpop.f32.mrb[29].mxu0 }
 0xd00   : > { %v2226_v45 = vpop.f32.mrb[30].mxu0 }
 0xd01   : > { %v2237_v44 = vmul.f32 %v3362_v41, %v2224_v42  ;;  %v2227_v46 = vadd.f32 %v3352_v22, %v2226_v45  ;;  %v3676_v47 = vpop.f32.mrb[31].mxu0 }
 0xd03   : > { %v2238_v3 = vmul.f32 %v3362_v41, %v2227_v46  ;;  %v4591_v14 = vadd.f32 %v3937_v48, %v2237_v44  ;;  %v3363_v41 = vld [vmem:[%s4912_s1] ss:$0 sm:$0xff] }
 0xd04   : > { %v3364_v44 = vld [vmem:[%s4914_s15] ss:$0 sm:$0xff] }
 0xd05   : > { %2243 = vadd.xlane.f32.xlu0 %v4591_v14  ;;  %v4594_v19 = vadd.f32 %v3938_v49, %v2238_v3  ;;  %v3849_v49 = vld [vmem:[%s4287_s18 + $0x40] sm:$0xff]  }
 0xd06   : > { %3497 = vmatprep.subr.bf16.mxu1 %v3849_v49 }
 0xd07   : > { %2245 = vadd.xlane.f32.xlu1 %v4594_v19 }
 0xd92   : > { %v2244_v55 = vpop.xlane.xlu0 %2243 }
 0xd93   : > { %v2247_v56 = vmul.f32 0.0078125, %v2244_v55  ;;  %v3858_v55 = vld [vmem:[%s4287_s18 + $0xd0] sm:$0xff]  }
 0xd94   : > { %v2246_v32 = vpop.xlane.xlu1 %2245 }
 0xd95   : > { %v4606_v57 = vsub.f32 %v4591_v14, %v2247_v56  ;;  %v2248_v58 = vmul.f32 0.0078125, %v2246_v32  ;;  %v3859_v56 = vld [vmem:[%s4287_s18 + $0x10] sm:$0xff]  }
 0xd96   : > { %v3860_v32 = vld [vmem:[%s4287_s18 + $0x90] sm:$0xff]  }
 0xd97   : > { %v4609_v59 = vsub.f32 %v4594_v19, %v2248_v58  ;;  %v2251_v60 = vmul.f32 %v4606_v57, %v4606_v57  ;;  %v3862_v58 = vld [vmem:[%s4287_s18 + $0xd8] sm:$0xff]  }
 0xd99   : > { %2253 = vadd.xlane.f32.xlu0 %v2251_v60  ;;  %v2252_v61 = vmul.f32 %v4609_v59, %v4609_v59  ;;  %v3864_v60 = vld [vmem:[%s4287_s18 + $0x98] sm:$0xff]  }
 0xd9d   : > { %2255 = vadd.xlane.f32.xlu0 %v2252_v61  ;;  %v3865_v61 = vld [vmem:[%s4287_s18 + $0x60] sm:$0xff]  }
 0xe26   : > { %v2254_v35 = vpop.xlane.xlu0 %2253 }
 0xe27   : > { %v2257_v36 = vmul.f32 0.0078125, %v2254_v35 }
 0xe29   : > { %v2259_v38 = vadd.f32 1e-06, %v2257_v36 }
 0xe2a   : > { %v2256_v39 = vpop.xlane.xlu0 %2255 }
 0xe2b   : > { %3917 = vrsqrt.f32 %v2259_v38  ;;  %v2258_v40 = vmul.f32 0.0078125, %v2256_v39 }
 0xe2d   : > { %v2260_v37 = vadd.f32 1e-06, %v2258_v40 }
 0xe2f   : > { %3919 = vrsqrt.f32 %v2260_v37 }
 0xe35   : > { %v3918_v22 = vpop.eup %3917 }
 0xe36   : > { %v2263_v31 = vmul.f32 %v3918_v22, %v4606_v57  ;;  %v3861_v57 = vld [vmem:[%s4287_s18 + $0x58] sm:$0xff]  }
 0xe38   : > { %v2271_v45 = vmul.f32 %v3363_v41, %v2263_v31 }
 0xe39   : > { %v3920_v42 = vpop.eup %3919 }
 0xe3a   : > { %v2264_v43 = vmul.f32 %v3920_v42, %v4609_v59  ;;  %v2279_v47 = vadd.f32 %v3364_v44, %v2271_v45  ;;  %v3863_v59 = vld [vmem:[%s4287_s18 + $0x18] sm:$0xff]  }
 0xe3c   : > { %v2272_v46 = vmul.f32 %v3363_v41, %v2264_v43 }
 0xe3e   : > { %v2280_v3 = vadd.f32 %v3364_v44, %v2272_v46 }
 0xe40   : > { %v2281_v48 = vpack.c.bf16 %v2280_v3, %v2279_v47 }
 0xe42   : > { %2529 = vmatmul.mubr.bf16.vlgmr.msra.gmra.mrb[44].mxu1 %v2281_v48  ;;  %2572 = vmatmul.mubr.bf16.vlgmr.msra.gmra.mrb[32].mxu0 %v2281_v48 }
 0xe43   : > { %3498 = vmatpush3.bf16.msra.mxu1 %v3851_v51  ;;  %3520 = vmatpush3.bf16.msra.mxu0 %v3852_v23 }
 0xe44   : > { %3499 = vmatprep.subr.bf16.mxu1 %v3853_v27  ;;  %3521 = vmatprep.subr.bf16.mxu0 %v3854_v52 }
 0xe47   : > { %3500 = vmatpush3.bf16.msra.mxu1 %v3855_v33  ;;  %3522 = vmatpush3.bf16.msra.mxu0 %v3856_v53 }
 0xe48   : > { %3501 = vmatprep.subr.bf16.mxu1 %v3857_v54  ;;  %3523 = vmatprep.subr.bf16.mxu0 %v3858_v55 }
 0xe4b   : > { %3502 = vmatpush3.bf16.msra.mxu1 %v3859_v56  ;;  %3524 = vmatpush3.bf16.msra.mxu0 %v3860_v32 }
 0xe4c   : > { %3503 = vmatprep.subr.bf16.mxu1 %v3861_v57  ;;  %3525 = vmatprep.subr.bf16.mxu0 %v3862_v58 }
 0xe4f   : > { %3504 = vmatpush3.bf16.msra.mxu1 %v3863_v59  ;;  %3526 = vmatpush3.bf16.msra.mxu0 %v3864_v60 }
 0xe50   : > { %3505 = vmatprep.subr.bf16.mxu1 %v3865_v61  ;;  %3527 = vmatprep.subr.bf16.mxu0 %v3866_v62 }
 0xe53   : > { %3506 = vmatpush3.bf16.msra.mxu1 %v3867_v63  ;;  %3528 = vmatpush3.bf16.msra.mxu0 %v3868_v28 }
 0xe54   : > { %3507 = vmatprep.subr.bf16.mxu1 %v3869_v0  ;;  %3529 = vmatprep.subr.bf16.mxu0 %v3870_v1 }
 0xe57   : > { %3508 = vmatpush3.bf16.msra.mxu1 %v3871_v2  ;;  %3530 = vmatpush3.bf16.msra.mxu0 %v3872_v6 }
 0xe58   : > { %3509 = vmatprep.subr.bf16.mxu1 %v3873_v8  ;;  %3531 = vmatprep.subr.bf16.mxu0 %v3874_v10 }
 0xe5b   : > { %3510 = vmatpush3.bf16.msra.mxu1 %v3875_v11  ;;  %3532 = vmatpush3.bf16.msra.mxu0 %v3876_v12 }
 0xe5c   : > { %3511 = vmatprep.subr.bf16.mxu1 %v3877_v13  ;;  %3533 = vmatprep.subr.bf16.mxu0 %v3878_v15 }
 0xe5f   : > { %3512 = vmatpush3.bf16.msra.mxu1 %v3879_v16  ;;  %3534 = vmatpush3.bf16.msra.mxu0 %v3880_v17 }
 0xf15   : > { %v2530_v29 = vpop.f32.mrb[44].mxu1  ;;  %v2573_v30 = vpop.f32.mrb[32].mxu0 }
 0xf16   : > { %v4691_v34 = vadd.f32 %v2530_v29, %v2319_v24  ;;  %v4693_v35 = vadd.f32 %v2573_v30, %v2327_v18  ;;  %v2532_v36 = vpop.f32.mrb[45].mxu1  ;;  %v2575_v38 = vpop.f32.mrb[33].mxu0 }
 0xf17   : > { %v4695_v39 = vadd.f32 %v2532_v36, %v2323_v25  ;;  %v4697_v40 = vadd.f32 %v2575_v38, %v2331_v26  ;;  %v2534_v9 = vpop.f32.mrb[46].mxu1  ;;  %v2577_v37 = vpop.f32.mrb[34].mxu0 }
 0xf18   : > { %v2582_v7 = vmul.f32 %v4691_v34, %v4691_v34  ;;  %v2584_v4 = vmul.f32 %v4693_v35, %v4693_v35  ;;  %v4703_v5 = vadd.f32 %v2534_v9, %v2319_v24  ;;  %v4705_v22 = vadd.f32 %v2577_v37, %v2327_v18  ;;  %v2536_v31 = vpop.f32.mrb[47].mxu1  ;;  %v2579_v41 = vpop.f32.mrb[35].mxu0 }
 0xf19   : > { %v2583_v42 = vmul.f32 %v4695_v39, %v4695_v39  ;;  %v2585_v43 = vmul.f32 %v4697_v40, %v4697_v40  ;;  %v4711_v45 = vadd.f32 %v2536_v31, %v2323_v25  ;;  %v4713_v44 = vadd.f32 %v2579_v41, %v2331_v26 }
 0xf1a   : > { %v2590_v46 = vmul.f32 %v2582_v7, %v4691_v34  ;;  %v2592_v47 = vmul.f32 %v2584_v4, %v4693_v35  ;;  %v2586_v3 = vmul.f32 %v4703_v5, %v4703_v5  ;;  %v2588_v48 = vmul.f32 %v4705_v22, %v4705_v22 }
 0xf1b   : > { %v2591_v49 = vmul.f32 %v2583_v42, %v4695_v39  ;;  %v2593_v50 = vmul.f32 %v2585_v43, %v4697_v40  ;;  %v2587_v51 = vmul.f32 %v4711_v45, %v4711_v45  ;;  %v2589_v23 = vmul.f32 %v4713_v44, %v4713_v44 }
 0xf1c   : > { %v2598_v27 = vmul.f32 0.044715, %v2590_v46  ;;  %v2600_v52 = vmul.f32 0.044715, %v2592_v47  ;;  %v2594_v33 = vmul.f32 %v2586_v3, %v4703_v5  ;;  %v2596_v53 = vmul.f32 %v2588_v48, %v4705_v22 }
 0xf1d   : > { %v2599_v54 = vmul.f32 0.044715, %v2591_v49  ;;  %v2601_v55 = vmul.f32 0.044715, %v2593_v50  ;;  %v2595_v56 = vmul.f32 %v2587_v51, %v4711_v45  ;;  %v2597_v32 = vmul.f32 %v2589_v23, %v4713_v44 }
 0xf1e   : > { %v2606_v57 = vadd.f32 %v2598_v27, %v4691_v34  ;;  %v2608_v58 = vadd.f32 %v2600_v52, %v4693_v35  ;;  %v2602_v59 = vmul.f32 0.044715, %v2594_v33  ;;  %v2604_v60 = vmul.f32 0.044715, %v2596_v53 }
 0xf1f   : > { %v2607_v61 = vadd.f32 %v2599_v54, %v4695_v39  ;;  %v2609_v62 = vadd.f32 %v2601_v55, %v4697_v40  ;;  %v2603_v63 = vmul.f32 0.044715, %v2595_v56  ;;  %v2605_v28 = vmul.f32 0.044715, %v2597_v32 }
 0xf20   : > { %v2614_v0 = vmul.f32 0.7978846, %v2606_v57  ;;  %v2616_v1 = vmul.f32 0.7978846, %v2608_v58  ;;  %v2610_v2 = vadd.f32 %v2602_v59, %v4703_v5  ;;  %v2612_v6 = vadd.f32 %v2604_v60, %v4705_v22 }
 0xf21   : > { %v2615_v8 = vmul.f32 0.7978846, %v2607_v61  ;;  %v2617_v10 = vmul.f32 0.7978846, %v2609_v62  ;;  %v2611_v11 = vadd.f32 %v2603_v63, %v4711_v45  ;;  %v2613_v12 = vadd.f32 %v2605_v28, %v4713_v44  ;;  %v3430_v28 = vld [vmem:[%s840_s17] ss:$0 sm:$0xff] }
 0xf22   : > { %3921 = vtanh.f32 %v2614_v0  ;;  %v2618_v13 = vmul.f32 0.7978846, %v2610_v2  ;;  %v2620_v15 = vmul.f32 0.7978846, %v2612_v6 }
 0xf23   : > { %3923 = vtanh.f32 %v2616_v1  ;;  %v2619_v16 = vmul.f32 0.7978846, %v2611_v11  ;;  %v2621_v17 = vmul.f32 0.7978846, %v2613_v12 }
 0xf24   : > { %3925 = vtanh.f32 %v2615_v8 }
 0xf25   : > { %3927 = vtanh.f32 %v2617_v10 }
 0xf26   : > { %3929 = vtanh.f32 %v2618_v13 }
 0xf27   : > { %3931 = vtanh.f32 %v2620_v15 }
 0xf28   : > { %3933 = vtanh.f32 %v2619_v16 }
 0xf29   : > { %3935 = vtanh.f32 %v2621_v17 }
 0xf2c   : > { %v3922_v20 = vpop.eup %3921 }
 0xf2d   : > { %v3924_v21 = vpop.eup %3923  ;;  %v2630_v24 = vadd.f32 1.0, %v3922_v20 }
 0xf2e   : > { %v3926_v18 = vpop.eup %3925  ;;  %v2632_v25 = vadd.f32 1.0, %v3924_v21 }
 0xf2f   : > { %v3928_v26 = vpop.eup %3927  ;;  %v2631_v29 = vadd.f32 1.0, %v3926_v18  ;;  %v2638_v9 = vmul.f32 0.5, %v2630_v24 }
 0xf30   : > { %v3930_v30 = vpop.eup %3929  ;;  %v2633_v36 = vadd.f32 1.0, %v3928_v26  ;;  %v2640_v4 = vmul.f32 0.5, %v2632_v25 }
 0xf31   : > { %v3932_v38 = vpop.eup %3931  ;;  %v2634_v37 = vadd.f32 1.0, %v3930_v30  ;;  %v2639_v46 = vmul.f32 0.5, %v2631_v29  ;;  %v2646_v49 = vmul.f32 %v2638_v9, %v4691_v34 }
 0xf32   : > { %v3934_v7 = vpop.eup %3933  ;;  %v2636_v31 = vadd.f32 1.0, %v3932_v38  ;;  %v2641_v48 = vmul.f32 0.5, %v2633_v36  ;;  %v2648_v23 = vmul.f32 %v2640_v4, %v4693_v35 }
 0xf33   : > { %v3936_v41 = vpop.eup %3935  ;;  %v2642_v42 = vmul.f32 0.5, %v2634_v37  ;;  %v2635_v43 = vadd.f32 1.0, %v3934_v7  ;;  %v2647_v33 = vmul.f32 %v2639_v46, %v4695_v39  ;;  %v3397_v39 = vld [vmem:[%s837_s2] ss:$0 sm:$0xff]  ;;  %s4917_s2 = sld [smem:[#allocation9_spill]] }
 0xf34   : > { %v2644_v47 = vmul.f32 0.5, %v2636_v31  ;;  %v2637_v3 = vadd.f32 1.0, %v3936_v41  ;;  %v2649_v55 = vmul.f32 %v2641_v48, %v4697_v40 }
 0xf35   : > { %v2650_v50 = vmul.f32 %v2642_v42, %v4703_v5  ;;  %v2643_v51 = vmul.f32 0.5, %v2635_v43 }
 0xf36   : > { %v2652_v27 = vmul.f32 %v2644_v47, %v4705_v22  ;;  %v2645_v52 = vmul.f32 0.5, %v2637_v3 }
 0xf37   : > { %v2651_v53 = vmul.f32 %v2643_v51, %v4711_v45  ;;  %v2654_v54 = vpack.c.bf16 %v2650_v50, %v2646_v49 }
 0xf38   : > { %v2653_v56 = vmul.f32 %v2645_v52, %v4713_v44  ;;  %v2656_v32 = vpack.c.bf16 %v2652_v27, %v2648_v23 }
 0xf39   : > { %v2655_v34 = vpack.c.bf16 %v2651_v53, %v2647_v33  ;;  %p3431_p1 = scmp.ne.s32.totalorder %s4917_s2, 1 }
 0xf3a   : > { %v2657_v57 = vpack.c.bf16 %v2653_v56, %v2649_v55  ;;  %vm3022_vm10 = vcmask (!%p3431_p1), 1040384   ;;  %s4918_s26 = sld [smem:[#allocation30_spill]] (!%p3431_p1)  ;;  %s4919_s20 = sld [smem:[#allocation31_spill]] (!%p3431_p1) }
 0xf3b   : > { %2953 = vmatprep.mubr.bf16.mxu1 %v2655_v34 }
 0xf3c   : > { %2994 = vmatprep.mubr.bf16.mxu0 %v2657_v57  ;;  %2954 = vmatmul.mubr.bf16.vlgmr.msra.gmra.mrb[48].mxu1 %v2654_v54 }
 0xf3d   : > { %2995 = vmatmul.mubr.bf16.vlgmr.msra.gmra.mrb[36].mxu0 %v2656_v32 }
 0xf40   : > { %v3020_v4 = vld [vmem:[%s4918_s26] sm:$0x1] (!%p3431_p1) }
 0xf41   : > { %v3021_v41 = vld [vmem:[%s4919_s20] sm:$0x1] (!%p3431_p1) }
0x100f   : > { %v3513_v35 = vpop.f32.mrb[48].mxu1 }
0x1010   : > { %v3535_v5 = vpop.f32.mrb[36].mxu0  ;;  %v3514_v22 = vpop.f32.mrb[49].mxu1 }
0x1011   : > { %v3515_v45 = vadd.f32 %v3514_v22, %v3513_v35  ;;  %v3536_v40 = vpop.f32.mrb[37].mxu0  ;;  %v3516_v58 = vpop.f32.mrb[50].mxu1 }
0x1012   : > { %v3537_v44 = vadd.f32 %v3536_v40, %v3535_v5  ;;  %v3538_v59 = vpop.f32.mrb[38].mxu0  ;;  %v3517_v60 = vpop.f32.mrb[51].mxu1 }
0x1013   : > { %v2956_v61 = vadd.f32 %v3515_v45, %v3397_v39  ;;  %v3518_v62 = vadd.f32 %v3517_v60, %v3516_v58  ;;  %v3539_v63 = vpop.f32.mrb[39].mxu0 }
0x1014   : > { %v3540_v0 = vadd.f32 %v3539_v63, %v3538_v59 }
0x1015   : > { %v2997_v1 = vadd.f32 %v3537_v44, %v2956_v61  ;;  %v2959_v2 = vadd.f32 %v3518_v62, %v3397_v39 }
0x1017   : > { %v3010_v6 = vmul.f32 %v3430_v28, %v2997_v1  ;;  %v3000_v8 = vadd.f32 %v3540_v0, %v2959_v2  ;;  %3019 = sbr.rel (%p3431_p1) target bundleno = 4441 (0x1159), region = 104 }
0x1019   : > { %v3012_v10 = vadd.f32 %v3010_v6, %v4591_v14  ;;  %v3011_v11 = vmul.f32 %v3430_v28, %v3000_v8 }
0x101b   : > { %3014 = vst [vmem:[#allocation2] sm:$0xff] %v3012_v10  ;;  %v3013_v12 = vadd.f32 %v3011_v11, %v4594_v19  ;;  %v3023_v13 = vsel (!%p3431_p1), %vm3022_vm10, %v3012_v10, 0.0 }
0x101c   : > { %3024 = vadd.xlane.f32.xlu0 (!%p3431_p1), %v3023_v13 }
0x101d   : > { %3015 = vst [vmem:[#allocation2 + $0x8] sm:$0xff] %v3013_v12  ;;  %v3026_v15 = vsel (!%p3431_p1), %vm3022_vm10, %v3013_v12, 0.0 }
0x1020   : > { %3027 = vadd.xlane.f32.xlu0 %v3026_v15 }
0x10a9   : > { %v3025_v16 = vpop.xlane.xlu0 %3024 }
0x10aa   : > { %v3029_v17 = vmul.f32 0.0078125, %v3025_v16 }
0x10ac   : > { %v3031_v20 = vsub.f32 %v3012_v10, %v3029_v17 }
0x10ad   : > { %v3028_v21 = vpop.xlane.xlu0 %3027 }
0x10ae   : > { %v3030_v24 = vmul.f32 0.0078125, %v3028_v21  ;;  %v3033_v18 = vmul.f32 %v3031_v20, %v3031_v20 }
0x10b0   : > { %v3032_v14 = vsub.f32 %v3013_v12, %v3030_v24  ;;  %v3035_v25 = vsel %vm3022_vm10, %v3033_v18, 0.0 }
0x10b1   : > { %3036 = vadd.xlane.f32.xlu1 %v3035_v25 }
0x10b2   : > { %v3034_v26 = vmul.f32 %v3032_v14, %v3032_v14 }
0x10b4   : > { %v3038_v19 = vsel %vm3022_vm10, %v3034_v26, 0.0 }
0x10b5   : > { %3039 = vadd.xlane.f32.xlu1 %v3038_v19 }
0x113e   : > { %v3037_v29 = vpop.xlane.xlu1 %3036 }
0x113f   : > { %v3041_v30 = vmul.f32 0.0078125, %v3037_v29 }
0x1141   : > { %v3043_v36 = vadd.f32 1e-06, %v3041_v30 }
0x1142   : > { %v3040_v38 = vpop.xlane.xlu1 %3039 }
0x1143   : > { %3939 = vrsqrt.f32 %v3043_v36  ;;  %v3042_v9 = vmul.f32 0.0078125, %v3040_v38 }
0x1145   : > { %v3044_v37 = vadd.f32 1e-06, %v3042_v9 }
0x1147   : > { %3941 = vrsqrt.f32 %v3044_v37 }
0x114d   : > { %v3940_v7 = vpop.eup %3939 }
0x114e   : > { %v3047_v31 = vmul.f32 %v3940_v7, %v3031_v20 }
0x1150   : > { %v3049_v42 = vmul.f32 %v3047_v31, %v3020_v4 }
0x1151   : > { %v3942_v43 = vpop.eup %3941 }
0x1152   : > { %v3051_v46 = vadd.f32 %v3049_v42, %v3021_v41  ;;  %v3048_v47 = vmul.f32 %v3942_v43, %v3032_v14 }
0x1154   : > { %3053 = vst [vmem:[%s4297_s12] sm:$0x1] %v3051_v46  ;;  %v3050_v3 = vmul.f32 %v3048_v47, %v3020_v4 }
0x1156   : > { %v3052_v48 = vadd.f32 %v3050_v3, %v3021_v41 }
0x1158   : > { %3054 = vst [vmem:[%s4297_s12 + $0x1] sm:$0x1] %v3052_v48 }
0x1159 PF: > { %s4920_s24 = sld [smem:[#allocation10_spill]]  ;;  %s4921_s3 = sld [smem:[#allocation7_spill]] }
0x115a   : > { %s4923_s1 = sld [smem:[#allocation32_spill]]  ;;  %s3069_s11 = sshll.u32 %s4297_s12, 4  ;;  %s4775_s11 = int_to_ptr.vmem [resolvable:$true] %s3069_s11 }
0x115b   : > { %s3943_s18 = scalar_lea.vmem %s4775_s11, 32  ;;  %s4047_s0 = smov [#allocation3]  }
0x115c   : > { %p3944_p2 = scmp.ne.s32.totalorder %s4775_s11, %s3943_s18  ;;  %s3947_s25 = sshll.u32 %s4047_s0, 4  ;;  %s3948_s25 = int_to_ptr.vmem [resolvable:$false] %s3947_s25 }
0x115d   : > { %s3949_s22 = scalar_lea.vmem %s3948_s25, 64  ;;  %p3950_p6 = scmp.lt.s32.totalorder %s4775_s11, %s3948_s25 }
0x115e   : > { %p3945_p4 = pnand %p3944_p2, %p4199_p3  ;;  %p3951_p7 = scmp.lt.s32.totalorder %s3949_s22, %s3943_s18 }
0x115f   : > { %s3446_s16 = sshll.u32 %s4920_s24, 5  ;;  %s4925_s15 = sand.u32 1, %s4921_s3  }
0x1160   : > { %s4924_s5 = smov %s4923_s1  ;;  %s4772_s6 = scalar_lea.hbm %s4923_s1, %s3446_s16 }
0x1161   : > { %s4779_s19 = scalar_lea.sflag [#allocation4], %s4925_s15  ;;  %p3946_p5 = pneg %p3945_p4 }
0x1162   : > { %p3952_p8 = por %p3951_p7, %p3950_p6 }
0x1164   : > { %p3953_p10 = pnand %p3952_p8, %p3946_p5 }
0x1166   : > { %3956 = shalt.err (!%p3953_p10)
}
0x1167   : > { %s3957_s12 = scalar_lea.hbm %s4772_s6, 32  ;;  %s3961_s28 = scalar_lea.hbm %s4924_s5, 64 }
0x1168   : > { %p3958_p11 = scmp.ne.s32.totalorder %s4772_s6, %s3957_s12  ;;  %p3962_p0 = scmp.lt.u32.totalorder %s4772_s6, %s4924_s5 }
0x1169   : > { %p3963_p1 = scmp.lt.u32.totalorder %s3961_s28, %s3957_s12  ;;  %p3965_p4 = scmp.lt.u32.totalorder %s3957_s12, %s4772_s6 }
0x116a   : > { %p3959_p12 = pnand %p3958_p11, %p4199_p3 }
0x116b   : > { %p3964_p2 = por %p3963_p1, %p3962_p0 }
0x116c   : > { %p3960_p13 = pneg %p3959_p12 }
0x116d   : > { %p3966_p5 = por %p3965_p4, %p3964_p2 }
0x116f   : > { %p3967_p6 = pnand %p3966_p5, %p3960_p13 }
0x1171   : > { %3970 = shalt.err (!%p3967_p6)
}
0x1172   : > { %s4048_s21 = smov 16   ;;  %s4049_s29 = smov 1  }
0x1173   : > { %3679 = dma.vmem_to_hbm [thread:$0]  (%p4199_p3), %s4775_s11, 32, %s4772_s6, %s4779_s19, %s4048_s21, %s4048_s21, %s4049_s29  }
0x1174 PF: > { %s4926_s20 = sld [smem:[#allocation13_spill]]  ;;  %s4927_s24 = sld [smem:[#allocation6_spill]] }
0x117a   : > { %p3685_p7 = scmp.ge.s32.totalorder %s4926_s20, 2  ;;  %s3084_s16 = sand.u32 1, %s4927_s24  }
0x117b   : > { %s3085_s23 = scalar_lea.sflag [#allocation4], %s3084_s16 }
0x117c   : > { %p3682_p8 = pnand %p3685_p7, %p4209_p9 }
0x117e   : > { %4004 = dma.done.wait (!%p3682_p8), %s3085_s23, 32  }
0x117f   : > { %4006 = vsyncadd (!%p3682_p8), %s3085_s23, 4294967264  ;;  %s32_s23 = sadd.s32 1, %s4926_s20   ;;  %s4929_s0 = sld [smem:[#allocation7_spill]] }
0x1180   : > { %p29_p10 = scmp.ge.s32.totalorder %s32_s23, 6   ;;  %s4930_s30 = sld [smem:[#allocation8_spill]] }
0x1181   : > { %s4931_s20 = sld [smem:[#allocation18_spill]]  ;;  %s4932_s21 = sld [smem:[#allocation11_spill]] }
0x1182   : > { %s4933_s1 = sld [smem:[#allocation12_spill]]  ;;  %s4934_s22 = sld [smem:[#allocation14_spill]] }
0x1183   : > { %s4935_s2 = sld [smem:[#allocation16_spill]]  ;;  %31 = sbr.rel (!%p29_p10) target bundleno = 20 (0x14), region = 181 }
0x118a   :  { %3090 = vsyncpa [#allocation4], 1 }
0x118b   :  { %3092 = vsyncpa [#allocation4 + $0x1], 1 }

</bundles_post_ra>
